<compile_context>
chip_gen: v5e
topology: v5e:2x2
jax: 0.10.0
libtpu: 0.0.40
codegen_flags: <defaults>
</compile_context>

<pallas_src>
import functools
import math

import jax
import jax.numpy as jnp
from jax.experimental import pallas as pl
from jax.experimental.pallas import tpu as pltpu

HID1 = 256   # layer-1 width per branch
HID2 = 512   # layer-2 width per branch


def _leaky_relu(x, slope=0.1):
    return jnp.where(x > 0, x, slope * x)


def _round_up(x, m):
    return (x + m - 1) // m * m


def mlp_decoder_kernel(
    z_ref,                      # (TM, L)             bf16
    w1_ref, b1_ref,             # (L, 512), (1, 512)  -- [w1_mu | w1_var] fused, VMEM-resident
    w2m_ref, b2m_ref,           # (256, 512), (1, 512)  VMEM-resident
    w2v_ref, b2v_ref,           # (256, 512), (1, 512)  VMEM-resident
    w3m_ref, b3m_ref,           # (512, TN), (1, TN)  -- streamed once over N-tiles
    w3v_ref, b3v_ref,           # (512, TN), (1, TN)
    mu_ref, var_ref,            # (TM, TN) out_dtype
):
    # Layers 1/2 are cheap relative to layer 3 (and the kernel is HBM-bound), so we recompute
    # them per grid step.  This lets the batch axis be the innermost grid axis, which means the
    # big layer-3 weight tiles (index_map depends only on the outer N axis) are DMA'd exactly
    # once regardless of batch size.
    z = z_ref[...]
    # Fused layer 1 for both branches: (TM, L) @ (L, 512) -> [mu(0:256) | var(256:512)]
    h1 = jnp.dot(z, w1_ref[...], preferred_element_type=jnp.float32) + b1_ref[...]
    h1 = _leaky_relu(h1).astype(jnp.bfloat16)

    h2m = jnp.dot(h1[:, :HID1], w2m_ref[...], preferred_element_type=jnp.float32) + b2m_ref[...]
    h2v = jnp.dot(h1[:, HID1:], w2v_ref[...], preferred_element_type=jnp.float32) + b2v_ref[...]
    h2m = _leaky_relu(h2m).astype(jnp.bfloat16)
    h2v = _leaky_relu(h2v).astype(jnp.bfloat16)

    # Layer 3 on the current N-tile of the (512, flat) weights.
    mu_raw = jnp.dot(h2m, w3m_ref[...], preferred_element_type=jnp.float32) + b3m_ref[...]
    var_raw = jnp.dot(h2v, w3v_ref[...], preferred_element_type=jnp.float32) + b3v_ref[...]

    # outputnonlin = Sigmoid, via a single tanh (1 EUP op/element, exact):
    #   sigmoid(x) = 0.5 * (tanh(0.5*x) + 1)
    mu_ref[...] = (0.5 * jnp.tanh(0.5 * mu_raw) + 0.5).astype(mu_ref.dtype)
    # nn.Softplus(): numerically stable  max(x, 0) + log1p(exp(-|x|))
    var_ref[...] = (jnp.maximum(var_raw, 0.0)
                    + jnp.log1p(jnp.exp(-jnp.abs(var_raw)))).astype(var_ref.dtype)


def init_decoder_params(key, latent_dim, flat_dim):
    """Kaiming-normal weights stored as (in, out) bf16, zero biases as (1, out) f32."""
    dims = [(latent_dim, HID1), (HID1, HID2), (HID2, flat_dim)]
    params = {}
    for branch in ("mu", "var"):
        ws, bs = [], []
        for fan_in, fan_out in dims:
            key, sub = jax.random.split(key)
            std = (2.0 / fan_in) ** 0.5
            w = jax.random.normal(sub, (fan_in, fan_out), jnp.float32) * std
            ws.append(w.astype(jnp.bfloat16))
            bs.append(jnp.zeros((1, fan_out), jnp.float32))
        params[branch] = (tuple(ws), tuple(bs))
    return params


@functools.partial(
    jax.jit, static_argnames=("output_shape", "batch_tile", "tile_n", "out_dtype"))
def mlp_decoder_forward(z, params, *, output_shape, batch_tile=256, tile_n=2048,
                        out_dtype=jnp.bfloat16):
    B, latent_dim = z.shape
    flat_dim = math.prod(output_shape)
    out_bytes = jnp.dtype(out_dtype).itemsize

    # ---- tile sizing (batch tile multiple of 8; N tile multiple of 128, lane-dense) ----
    tm = min(_round_up(batch_tile, 8), _round_up(B, 8))
    b_pad = _round_up(B, tm)
    tn = min(_round_up(tile_n, 128), _round_up(flat_dim, 128))
    flat_pad = _round_up(flat_dim, tn)

    num_n = flat_pad // tn
    num_b = b_pad // tm
    grid = (num_n, num_b)          # N outer ("parallel"), batch inner ("arbitrary")

    (w1m, w2m, w3m), (b1m, b2m, b3m) = params["mu"]
    (w1v, w2v, w3v), (b1v, b2v, b3v) = params["var"]

    # Fuse layer-1 of both branches (shared input z) into one (L, 512) matmul.
    w1 = jnp.concatenate([w1m, w1v], axis=1)                 # (L, 512) bf16
    b1 = jnp.concatenate([b1m, b1v], axis=1)                 # (1, 512) f32

    def pad_out(w, b):
        pad = flat_pad - flat_dim
        if pad:
            w = jnp.pad(w, ((0, 0), (0, pad)))
            b = jnp.pad(b, ((0, 0), (0, pad)))
        return w, b

    w3m_p, b3m_p = pad_out(w3m, b3m)
    w3v_p, b3v_p = pad_out(w3v, b3v)

    zp = z.astype(jnp.bfloat16)
    if b_pad != B:
        zp = jnp.pad(zp, ((0, b_pad - B), (0, 0)))

    # index_maps: layer-1/2 weights constant (resident, DMA'd once); layer-3 weights depend only
    # on the outer N index (DMA'd once per N tile = once total); z / outputs move with both axes.
    resident = lambda shape: pl.BlockSpec(shape, lambda n, b: (0, 0))
    streamed = lambda shape: pl.BlockSpec(shape, lambda n, b: (0, n))
    z_spec = pl.BlockSpec((tm, latent_dim), lambda n, b: (b, 0))
    out_spec = pl.BlockSpec((tm, tn), lambda n, b: (b, n))

    in_specs = [
        z_spec,                                                          # z
        resident((latent_dim, 2 * HID1)), resident((1, 2 * HID1)),       # fused layer 1
        resident((HID1, HID2)), resident((1, HID2)),                     # layer 2 (mu)
        resident((HID1, HID2)), resident((1, HID2)),                     # layer 2 (var)
        streamed((HID2, tn)), streamed((1, tn)),                         # layer 3 (mu)
        streamed((HID2, tn)), streamed((1, tn)),                         # layer 3 (var)
    ]

    # ---- VMEM budget: double-buffered inputs/outputs + residents; cap at 48 MiB (< v7x 64 MiB)
    vmem_est = 2 * (
        tm * latent_dim * 2
        + latent_dim * 2 * HID1 * 2 + 2 * HID1 * 4
        + 2 * (HID1 * HID2 * 2 + HID2 * 4)
        + 2 * (HID2 * tn * 2 + tn * 4)
        + 2 * tm * tn * out_bytes
    )
    vmem_limit = max(32 * 1024 * 1024, min(vmem_est + (8 << 20), 48 * 1024 * 1024))

    # ---- advisory cost estimate reflecting the actual schedule ----
    hidden_flops = num_n * 2 * b_pad * (latent_dim * 2 * HID1 + 2 * HID1 * HID2)
    layer3_flops = 2 * b_pad * 2 * HID2 * flat_pad
    flops = hidden_flops + layer3_flops
    transcendentals = 3 * b_pad * flat_pad          # 1 tanh (mu) + exp + log1p (var)
    bytes_accessed = (
        num_n * b_pad * latent_dim * 2                                   # z re-read per N tile
        + (w1.size + w2m.size + w2v.size) * 2
        + (b1.size + b2m.size + b2v.size) * 4
        + (w3m_p.size + w3v_p.size) * 2 + (b3m_p.size + b3v_p.size) * 4  # W3 read exactly once
        + 2 * b_pad * flat_pad * out_bytes                               # outputs at real dtype
    )

    mu_flat, var_flat = pl.pallas_call(
        mlp_decoder_kernel,
        out_shape=(
            jax.ShapeDtypeStruct((b_pad, flat_pad), out_dtype),
            jax.ShapeDtypeStruct((b_pad, flat_pad), out_dtype),
        ),
        grid_spec=pltpu.PrefetchScalarGridSpec(
            num_scalar_prefetch=0,
            grid=grid,
            in_specs=in_specs,
            out_specs=[out_spec, out_spec],
        ),
        compiler_params=pltpu.CompilerParams(
            dimension_semantics=("parallel", "arbitrary"),
            vmem_limit_bytes=vmem_limit,
        ),
        cost_estimate=pl.CostEstimate(
            flops=flops,
            transcendentals=transcendentals,
            bytes_accessed=bytes_accessed,
        ),
    )(zp, w1, b1, w2m, b2m, w2v, b2v, w3m_p, b3m_p, w3v_p, b3v_p)

    x_mu = mu_flat[:B, :flat_dim].reshape((-1,) + tuple(output_shape))
    x_var = var_flat[:B, :flat_dim].reshape((-1,) + tuple(output_shape))
    return x_mu, x_var


def reference_forward(z, params, output_shape, out_dtype=jnp.bfloat16):
    """Pure-JAX reference mirroring the kernel's numerics (bf16 weights, f32 accumulation)."""
    def mlp(ws, bs):
        h = jnp.dot(z.astype(jnp.bfloat16), ws[0],
                    preferred_element_type=jnp.float32) + bs[0]
        h = _leaky_relu(h).astype(jnp.bfloat16)
        h = jnp.dot(h, ws[1], preferred_element_type=jnp.float32) + bs[1]
        h = _leaky_relu(h).astype(jnp.bfloat16)
        return jnp.dot(h, ws[2], preferred_element_type=jnp.float32) + bs[2]

    mu = jax.nn.sigmoid(mlp(*params["mu"])).astype(out_dtype)
    var = jax.nn.softplus(mlp(*params["var"])).astype(out_dtype)
    return (mu.reshape((-1,) + tuple(output_shape)),
            var.reshape((-1,) + tuple(output_shape)))


def _check(a, b, atol, rtol):
    return jnp.allclose(a.astype(jnp.float32), b.astype(jnp.float32), atol=atol, rtol=rtol)


if __name__ == "__main__":
    key = jax.random.PRNGKey(0)

    # ---- case 1: 2x2 (N x batch) grid; exercises W3 single-stream + hidden recompute ----
    output_shape1 = (1, 16, 16)       # flat = 256
    latent1, batch1 = 32, 32
    key, kz1, kp1 = jax.random.split(key, 3)
    z1 = jax.random.normal(kz1, (batch1, latent1), jnp.float32)
    params1 = init_decoder_params(kp1, latent1, math.prod(output_shape1))

    mu1, var1 = mlp_decoder_forward(z1, params1, output_shape=output_shape1,
                                    batch_tile=16, tile_n=128)
    jax.block_until_ready((mu1, var1))
    rmu1, rvar1 = reference_forward(z1, params1, output_shape1, out_dtype=jnp.bfloat16)
    assert mu1.shape == (batch1,) + output_shape1 and mu1.dtype == jnp.bfloat16
    assert var1.shape == (batch1,) + output_shape1 and var1.dtype == jnp.bfloat16
    assert _check(mu1, rmu1, atol=2e-2, rtol=2e-2)
    assert _check(var1, rvar1, atol=2e-2, rtol=2e-2)

    # ---- case 2: odd batch / flat (padding path), default tiles, f32 output flag ----
    output_shape2 = (3, 7, 7)         # flat = 147
    latent2, batch2 = 24, 5
    key, kz2, kp2 = jax.random.split(key, 3)
    z2 = jax.random.normal(kz2, (batch2, latent2), jnp.float32)
    params2 = init_decoder_params(kp2, latent2, math.prod(output_shape2))

    mu2, var2 = mlp_decoder_forward(z2, params2, output_shape=output_shape2,
                                    out_dtype=jnp.float32)
    jax.block_until_ready((mu2, var2))
    rmu2, rvar2 = reference_forward(z2, params2, output_shape2, out_dtype=jnp.float32)
    assert mu2.shape == (batch2,) + output_shape2 and mu2.dtype == jnp.float32
    assert var2.shape == (batch2,) + output_shape2 and var2.dtype == jnp.float32
    assert _check(mu2, rmu2, atol=2e-3, rtol=2e-3)
    assert _check(var2, rvar2, atol=2e-3, rtol=2e-3)

    print("KERNEL_OK")
</pallas_src>

<mosaic_0001>
module attributes {stable_mosaic.version = 11 : i64} {
  func.func @mlp_decoder_kernel(%arg0: i32, %arg1: i32, %arg2: memref<16x32xbf16, #tpu.memory_space<vmem>>, %arg3: memref<32x512xbf16, #tpu.memory_space<vmem>>, %arg4: memref<1x512xf32, #tpu.memory_space<vmem>>, %arg5: memref<256x512xbf16, #tpu.memory_space<vmem>>, %arg6: memref<1x512xf32, #tpu.memory_space<vmem>>, %arg7: memref<256x512xbf16, #tpu.memory_space<vmem>>, %arg8: memref<1x512xf32, #tpu.memory_space<vmem>>, %arg9: memref<512x128xbf16, #tpu.memory_space<vmem>>, %arg10: memref<1x128xf32, #tpu.memory_space<vmem>>, %arg11: memref<512x128xbf16, #tpu.memory_space<vmem>>, %arg12: memref<1x128xf32, #tpu.memory_space<vmem>>, %arg13: memref<16x128xbf16, #tpu.memory_space<vmem>>, %arg14: memref<16x128xbf16, #tpu.memory_space<vmem>>) attributes {dimension_semantics = [#tpu.dimension_semantics<parallel>, #tpu.dimension_semantics<arbitrary>], iteration_bounds = array<i64: 2, 2>, scalar_prefetch = 0 : i64, scratch_operands = 0 : i64, tpu.core_type = #tpu.core_type<tc>, window_params = [{transform_indices = @transform_0, window_bounds = array<i64: 16, 32>}, {pipeline_mode = #tpu.pipeline_mode<synchronous>, transform_indices = @transform_1, window_bounds = array<i64: 32, 512>}, {pipeline_mode = #tpu.pipeline_mode<synchronous>, transform_indices = @transform_2, window_bounds = array<i64: 1, 512>}, {pipeline_mode = #tpu.pipeline_mode<synchronous>, transform_indices = @transform_3, window_bounds = array<i64: 256, 512>}, {pipeline_mode = #tpu.pipeline_mode<synchronous>, transform_indices = @transform_4, window_bounds = array<i64: 1, 512>}, {pipeline_mode = #tpu.pipeline_mode<synchronous>, transform_indices = @transform_5, window_bounds = array<i64: 256, 512>}, {pipeline_mode = #tpu.pipeline_mode<synchronous>, transform_indices = @transform_6, window_bounds = array<i64: 1, 512>}, {transform_indices = @transform_7, window_bounds = array<i64: 512, 128>}, {transform_indices = @transform_8, window_bounds = array<i64: 1, 128>}, {transform_indices = @transform_9, window_bounds = array<i64: 512, 128>}, {transform_indices = @transform_10, window_bounds = array<i64: 1, 128>}, {transform_indices = @transform_11, window_bounds = array<i64: 16, 128>}, {transform_indices = @transform_12, window_bounds = array<i64: 16, 128>}]} {
    %c0 = arith.constant 0 : index
    %c0_0 = arith.constant 0 : index
    %0 = vector.load %arg2[%c0, %c0_0] : memref<16x32xbf16, #tpu.memory_space<vmem>>, vector<16x32xbf16>
    %c0_1 = arith.constant 0 : index
    %c0_2 = arith.constant 0 : index
    %1 = vector.load %arg3[%c0_1, %c0_2] : memref<32x512xbf16, #tpu.memory_space<vmem>>, vector<32x512xbf16>
    %cst = arith.constant dense<0.000000e+00> : vector<16x512xf32>
    %2 = tpu.matmul %0, %1, %cst {dimension_numbers = #tpu.dot_dimension_numbers<[1], [0], [0], [1], [0, 0, 1, 1], [], []>} : vector<16x32xbf16>, vector<32x512xbf16>, vector<16x512xf32> -> vector<16x512xf32>
    %c0_3 = arith.constant 0 : index
    %c0_4 = arith.constant 0 : index
    %3 = vector.load %arg4[%c0_3, %c0_4] : memref<1x512xf32, #tpu.memory_space<vmem>>, vector<1x512xf32>
    %4 = vector.broadcast %3 : vector<1x512xf32> to vector<16x512xf32>
    %5 = arith.addf %2, %4 : vector<16x512xf32>
    %cst_5 = arith.constant 0.000000e+00 : f32
    %6 = vector.broadcast %cst_5 : f32 to vector<16x512xf32>
    %7 = arith.cmpf ogt, %5, %6 : vector<16x512xf32>
    %cst_6 = arith.constant 1.000000e-01 : f32
    %8 = vector.broadcast %cst_6 : f32 to vector<16x512xf32>
    %9 = arith.mulf %8, %5 : vector<16x512xf32>
    %10 = arith.select %7, %5, %9 : vector<16x512xi1>, vector<16x512xf32>
    %11 = arith.truncf %10 : vector<16x512xf32> to vector<16x512xbf16>
    %12 = vector.extract_strided_slice %11 {offsets = [0, 0], sizes = [16, 256], strides = [1, 1]} : vector<16x512xbf16> to vector<16x256xbf16>
    %c0_7 = arith.constant 0 : index
    %c0_8 = arith.constant 0 : index
    %13 = vector.load %arg5[%c0_7, %c0_8] : memref<256x512xbf16, #tpu.memory_space<vmem>>, vector<256x512xbf16>
    %cst_9 = arith.constant dense<0.000000e+00> : vector<16x512xf32>
    %14 = tpu.matmul %12, %13, %cst_9 {dimension_numbers = #tpu.dot_dimension_numbers<[1], [0], [0], [1], [0, 0, 1, 1], [], []>} : vector<16x256xbf16>, vector<256x512xbf16>, vector<16x512xf32> -> vector<16x512xf32>
    %c0_10 = arith.constant 0 : index
    %c0_11 = arith.constant 0 : index
    %15 = vector.load %arg6[%c0_10, %c0_11] : memref<1x512xf32, #tpu.memory_space<vmem>>, vector<1x512xf32>
    %16 = vector.broadcast %15 : vector<1x512xf32> to vector<16x512xf32>
    %17 = arith.addf %14, %16 : vector<16x512xf32>
    %18 = vector.extract_strided_slice %11 {offsets = [0, 256], sizes = [16, 256], strides = [1, 1]} : vector<16x512xbf16> to vector<16x256xbf16>
    %c0_12 = arith.constant 0 : index
    %c0_13 = arith.constant 0 : index
    %19 = vector.load %arg7[%c0_12, %c0_13] : memref<256x512xbf16, #tpu.memory_space<vmem>>, vector<256x512xbf16>
    %cst_14 = arith.constant dense<0.000000e+00> : vector<16x512xf32>
    %20 = tpu.matmul %18, %19, %cst_14 {dimension_numbers = #tpu.dot_dimension_numbers<[1], [0], [0], [1], [0, 0, 1, 1], [], []>} : vector<16x256xbf16>, vector<256x512xbf16>, vector<16x512xf32> -> vector<16x512xf32>
    %c0_15 = arith.constant 0 : index
    %c0_16 = arith.constant 0 : index
    %21 = vector.load %arg8[%c0_15, %c0_16] : memref<1x512xf32, #tpu.memory_space<vmem>>, vector<1x512xf32>
    %22 = vector.broadcast %21 : vector<1x512xf32> to vector<16x512xf32>
    %23 = arith.addf %20, %22 : vector<16x512xf32>
    %cst_17 = arith.constant 0.000000e+00 : f32
    %24 = vector.broadcast %cst_17 : f32 to vector<16x512xf32>
    %25 = arith.cmpf ogt, %17, %24 : vector<16x512xf32>
    %cst_18 = arith.constant 1.000000e-01 : f32
    %26 = vector.broadcast %cst_18 : f32 to vector<16x512xf32>
    %27 = arith.mulf %26, %17 : vector<16x512xf32>
    %28 = arith.select %25, %17, %27 : vector<16x512xi1>, vector<16x512xf32>
    %29 = arith.truncf %28 : vector<16x512xf32> to vector<16x512xbf16>
    %cst_19 = arith.constant 0.000000e+00 : f32
    %30 = vector.broadcast %cst_19 : f32 to vector<16x512xf32>
    %31 = arith.cmpf ogt, %23, %30 : vector<16x512xf32>
    %cst_20 = arith.constant 1.000000e-01 : f32
    %32 = vector.broadcast %cst_20 : f32 to vector<16x512xf32>
    %33 = arith.mulf %32, %23 : vector<16x512xf32>
    %34 = arith.select %31, %23, %33 : vector<16x512xi1>, vector<16x512xf32>
    %35 = arith.truncf %34 : vector<16x512xf32> to vector<16x512xbf16>
    %c0_21 = arith.constant 0 : index
    %c0_22 = arith.constant 0 : index
    %36 = vector.load %arg9[%c0_21, %c0_22] : memref<512x128xbf16, #tpu.memory_space<vmem>>, vector<512x128xbf16>
    %cst_23 = arith.constant dense<0.000000e+00> : vector<16x128xf32>
    %37 = tpu.matmul %29, %36, %cst_23 {dimension_numbers = #tpu.dot_dimension_numbers<[1], [0], [0], [1], [0, 0, 1, 1], [], []>} : vector<16x512xbf16>, vector<512x128xbf16>, vector<16x128xf32> -> vector<16x128xf32>
    %c0_24 = arith.constant 0 : index
    %c0_25 = arith.constant 0 : index
    %38 = vector.load %arg10[%c0_24, %c0_25] : memref<1x128xf32, #tpu.memory_space<vmem>>, vector<1x128xf32>
    %39 = vector.broadcast %38 : vector<1x128xf32> to vector<16x128xf32>
    %40 = arith.addf %37, %39 : vector<16x128xf32>
    %c0_26 = arith.constant 0 : index
    %c0_27 = arith.constant 0 : index
    %41 = vector.load %arg11[%c0_26, %c0_27] : memref<512x128xbf16, #tpu.memory_space<vmem>>, vector<512x128xbf16>
    %cst_28 = arith.constant dense<0.000000e+00> : vector<16x128xf32>
    %42 = tpu.matmul %35, %41, %cst_28 {dimension_numbers = #tpu.dot_dimension_numbers<[1], [0], [0], [1], [0, 0, 1, 1], [], []>} : vector<16x512xbf16>, vector<512x128xbf16>, vector<16x128xf32> -> vector<16x128xf32>
    %c0_29 = arith.constant 0 : index
    %c0_30 = arith.constant 0 : index
    %43 = vector.load %arg12[%c0_29, %c0_30] : memref<1x128xf32, #tpu.memory_space<vmem>>, vector<1x128xf32>
    %44 = vector.broadcast %43 : vector<1x128xf32> to vector<16x128xf32>
    %45 = arith.addf %42, %44 : vector<16x128xf32>
    %cst_31 = arith.constant 5.000000e-01 : f32
    %46 = vector.broadcast %cst_31 : f32 to vector<16x128xf32>
    %47 = arith.mulf %46, %40 : vector<16x128xf32>
    %48 = math.tanh %47 : vector<16x128xf32>
    %cst_32 = arith.constant 5.000000e-01 : f32
    %49 = vector.broadcast %cst_32 : f32 to vector<16x128xf32>
    %50 = arith.mulf %49, %48 : vector<16x128xf32>
    %cst_33 = arith.constant 5.000000e-01 : f32
    %51 = vector.broadcast %cst_33 : f32 to vector<16x128xf32>
    %52 = arith.addf %50, %51 : vector<16x128xf32>
    %53 = arith.truncf %52 : vector<16x128xf32> to vector<16x128xbf16>
    %c0_34 = arith.constant 0 : index
    %c0_35 = arith.constant 0 : index
    %54 = vector.load %arg13[%c0_34, %c0_35] : memref<16x128xbf16, #tpu.memory_space<vmem>>, vector<16x128xbf16>
    tpu.vector_store %arg13[%c0_34, %c0_35], %53 {strides = array<i32>} : memref<16x128xbf16, #tpu.memory_space<vmem>>, vector<16x128xbf16>,
    %cst_36 = arith.constant 0.000000e+00 : f32
    %55 = vector.broadcast %cst_36 : f32 to vector<16x128xf32>
    %56 = arith.maximumf %45, %55 : vector<16x128xf32>
    %57 = math.absf %45 : vector<16x128xf32>
    %cst_37 = arith.constant 0.000000e+00 : f32
    %58 = vector.broadcast %cst_37 : f32 to vector<16x128xf32>
    %59 = arith.subf %58, %57 : vector<16x128xf32>
    %60 = math.exp %59 : vector<16x128xf32>
    %61 = math.log1p %60 : vector<16x128xf32>
    %62 = arith.addf %56, %61 : vector<16x128xf32>
    %63 = arith.truncf %62 : vector<16x128xf32> to vector<16x128xbf16>
    %c0_38 = arith.constant 0 : index
    %c0_39 = arith.constant 0 : index
    %64 = vector.load %arg14[%c0_38, %c0_39] : memref<16x128xbf16, #tpu.memory_space<vmem>>, vector<16x128xbf16>
    tpu.vector_store %arg14[%c0_38, %c0_39], %63 {strides = array<i32>} : memref<16x128xbf16, #tpu.memory_space<vmem>>, vector<16x128xbf16>,
    return
  }
  func.func @transform_0(%arg0: i32, %arg1: i32) -> (i32, i32) {
    %c0_i32 = arith.constant 0 : i32
    %c0_i32_0 = arith.constant 0 : i32
    return %arg1, %c0_i32 : i32, i32
  }
  func.func @transform_1(%arg0: i32, %arg1: i32) -> (i32, i32) {
    %c0_i32 = arith.constant 0 : i32
    %c0_i32_0 = arith.constant 0 : i32
    %c0_i32_1 = arith.constant 0 : i32
    return %c0_i32, %c0_i32_0 : i32, i32
  }
  func.func @transform_2(%arg0: i32, %arg1: i32) -> (i32, i32) {
    %c0_i32 = arith.constant 0 : i32
    %c0_i32_0 = arith.constant 0 : i32
    %c0_i32_1 = arith.constant 0 : i32
    return %c0_i32, %c0_i32_0 : i32, i32
  }
  func.func @transform_3(%arg0: i32, %arg1: i32) -> (i32, i32) {
    %c0_i32 = arith.constant 0 : i32
    %c0_i32_0 = arith.constant 0 : i32
    %c0_i32_1 = arith.constant 0 : i32
    return %c0_i32, %c0_i32_0 : i32, i32
  }
  func.func @transform_4(%arg0: i32, %arg1: i32) -> (i32, i32) {
    %c0_i32 = arith.constant 0 : i32
    %c0_i32_0 = arith.constant 0 : i32
    %c0_i32_1 = arith.constant 0 : i32
    return %c0_i32, %c0_i32_0 : i32, i32
  }
  func.func @transform_5(%arg0: i32, %arg1: i32) -> (i32, i32) {
    %c0_i32 = arith.constant 0 : i32
    %c0_i32_0 = arith.constant 0 : i32
    %c0_i32_1 = arith.constant 0 : i32
    return %c0_i32, %c0_i32_0 : i32, i32
  }
  func.func @transform_6(%arg0: i32, %arg1: i32) -> (i32, i32) {
    %c0_i32 = arith.constant 0 : i32
    %c0_i32_0 = arith.constant 0 : i32
    %c0_i32_1 = arith.constant 0 : i32
    return %c0_i32, %c0_i32_0 : i32, i32
  }
  func.func @transform_7(%arg0: i32, %arg1: i32) -> (i32, i32) {
    %c0_i32 = arith.constant 0 : i32
    %c0_i32_0 = arith.constant 0 : i32
    return %c0_i32, %arg0 : i32, i32
  }
  func.func @transform_8(%arg0: i32, %arg1: i32) -> (i32, i32) {
    %c0_i32 = arith.constant 0 : i32
    %c0_i32_0 = arith.constant 0 : i32
    return %c0_i32, %arg0 : i32, i32
  }
  func.func @transform_9(%arg0: i32, %arg1: i32) -> (i32, i32) {
    %c0_i32 = arith.constant 0 : i32
    %c0_i32_0 = arith.constant 0 : i32
    return %c0_i32, %arg0 : i32, i32
  }
  func.func @transform_10(%arg0: i32, %arg1: i32) -> (i32, i32) {
    %c0_i32 = arith.constant 0 : i32
    %c0_i32_0 = arith.constant 0 : i32
    return %c0_i32, %arg0 : i32, i32
  }
  func.func @transform_11(%arg0: i32, %arg1: i32) -> (i32, i32) {
    %c0_i32 = arith.constant 0 : i32
    return %arg1, %arg0 : i32, i32
  }
  func.func @transform_12(%arg0: i32, %arg1: i32) -> (i32, i32) {
    %c0_i32 = arith.constant 0 : i32
    return %arg1, %arg0 : i32, i32
  }
}

</mosaic_0001>

<bundles_post_ra>
// kernel: mlp_decoder_forward.1
= control target key start
LH: loop header
LB: loop body
LE: loop exit
PB: predicated region body
PF: predicated region fallthrough
CT: control target
= control target key end

     0   :  { %s4672_s0 = inlined_call_operand.vmem [shape: bf16[32,32], index: 0, kind: input, shape index: {}]   ;;  %s4673_s1 = inlined_call_operand.vmem [shape: bf16[32,512], index: 1, kind: input, shape index: {}]   ;;  %s4674_s2 = inlined_call_operand.vmem [shape: f32[1,512], index: 2, kind: input, shape index: {}]   ;;  %s4675_s3 = inlined_call_operand.hbm [shape: bf16[256,512], index: 3, kind: input, shape index: {}]   ;;  %s4676_s4 = inlined_call_operand.vmem [shape: f32[1,512], index: 4, kind: input, shape index: {}]   ;;  %s4677_s5 = inlined_call_operand.hbm [shape: bf16[256,512], index: 5, kind: input, shape index: {}]   ;;  %s4678_s6 = inlined_call_operand.vmem [shape: f32[1,512], index: 6, kind: input, shape index: {}]   ;;  %s4679_s7 = inlined_call_operand.hbm [shape: bf16[512,256], index: 7, kind: input, shape index: {}]   ;;  %s4680_s8 = inlined_call_operand.vmem [shape: f32[1,256], index: 8, kind: input, shape index: {}]   ;;  %s4681_s9 = inlined_call_operand.hbm [shape: bf16[512,256], index: 9, kind: input, shape index: {}]   ;;  %s4682_s10 = inlined_call_operand.vmem [shape: f32[1,256], index: 10, kind: input, shape index: {}]   ;;  %s4683_s11 = inlined_call_operand.vmem [shape: bf16[32,256], index: 11, kind: output, shape index: {0}]   ;;  %s4684_s12 = inlined_call_operand.vmem [shape: bf16[32,256], index: 12, kind: output, shape index: {1}]  }
   0x1   :  { %4698 = sst [smem:[#allocation23_spill]] %s4672_s0 }
   0x2   :  { %4699 = sst [smem:[#allocation24_spill]] %s4674_s2 }
   0x3   :  { %4700 = sst [smem:[#allocation25_spill]] %s4675_s3 }
   0x4   :  { %4701 = sst [smem:[#allocation26_spill]] %s4676_s4 }
   0x5   :  { %4702 = sst [smem:[#allocation27_spill]] %s4678_s6 }
   0x6   :  { %4703 = sst [smem:[#allocation28_spill]] %s4679_s7 }
   0x7   :  { %4704 = sst [smem:[#allocation29_spill]] %s4680_s8 }
   0x8   :  { %4705 = sst [smem:[#allocation30_spill]] %s4682_s10 }
   0x9   :  { %4706 = sst [smem:[#allocation31_spill]] %s4683_s11 }
   0xa   :  { %4707 = sst [smem:[#allocation32_spill]] %s4684_s12 }
   0xb   :  { %18 = vsyncpa [#allocation3], 0 }
   0xc   :  { %19 = vsyncpa [#allocation5], 0  ;;  %s4247_s21 = smov 0   ;;  %s4249_s22 = smov 0  }
   0xd   :  { %s4251_s23 = smov 0   ;;  %s4253_s24 = smov 0  }
   0xe   :  { %s4255_s25 = smov 0   ;;  %s4257_s26 = smov 0  }
   0xf   :  { %s4259_s27 = smov 0   ;;  %s4261_s28 = smov 0  }
  0x10   :  { %s4263_s29 = smov 0   ;;  %s4265_s30 = smov 0  }
  0x11 LB: > { %4708 = sst [smem:[#allocation13_spill]] %s4137_s21  ;;  %s4296_s13 = sadd.s32 4294967295, %s4173_s30   ;;  %s4173_s30 = sphi %s4265_s30, %s25_s30   ;;  %s4169_s29 = sphi %s4263_s29, %s4751_s29   ;;  %s4165_s28 = sphi %s4261_s28, %s4750_s28   ;;  %s4161_s27 = sphi %s4259_s27, %s4749_s27   ;;  %s4157_s26 = sphi %s4257_s26, %s4748_s26   ;;  %s4153_s25 = sphi %s4255_s25, %s4747_s25   ;;  %s4149_s24 = sphi %s4253_s24, %s4755_s24   ;;  %s4145_s23 = sphi %s4251_s23, %s4754_s23   ;;  %s4141_s22 = sphi %s4249_s22, %s4753_s22   ;;  %s4137_s21 = sphi %s4247_s21, %s4752_s21  }
  0x12   : > { %4709 = sst [smem:[#allocation14_spill]] %s4153_s25  ;;  %p203_p0 = scmp.ne.s32.totalorder %s4153_s25, %s4149_s24 }
  0x13   : > { %4710 = sst [smem:[#allocation15_spill]] %s4161_s27  ;;  %p204_p1 = scmp.eq.s32.totalorder %s4173_s30, 0 }
  0x14   : > { %4711 = sst [smem:[#allocation16_spill]] %s4165_s28  ;;  %p209_p2 = scmp.ne.s32.totalorder %s4149_s24, %s4145_s23 }
  0x15   : > { %4712 = sst [smem:[#allocation17_spill]] %s4169_s29  ;;  %p210_p3 = scmp.eq.s32.totalorder %s4296_s13, 0 }
  0x16   : > { %4713 = sst [smem:[#allocation18_spill]] %s4173_s30  ;;  %p4304_p4 = por %p204_p1, %p203_p0 }
  0x17   : > { %p4311_p5 = por %p210_p3, %p209_p2  ;;  %p312_p6 = scmp.ne.s32.totalorder %s4141_s22, %s4137_s21 }
  0x18   : > { %p313_p7 = scmp.eq.s32.totalorder %s4296_s13, 3  ;;  %p2783_p8 = scmp.ge.s32.totalorder %s4173_s30, 1 }
  0x19   : > { %p354_p9 = scmp.lt.s32.totalorder %s4173_s30, 5  ;;  %s4718_s3 = sld [smem:[#allocation25_spill]] }
  0x1a   : > { %p4320_p10 = por %p313_p7, %p312_p6  ;;  %s4175_s14 = smov [#allocation2]  }
  0x1b   : > { %p4327_p11 = pnand %p2783_p8, %p354_p9  ;;  %s373_s12 = sshll.u32 %s4175_s14, 4  ;;  %s374_s12 = int_to_ptr.vmem [resolvable:$true] %s373_s12 }
  0x1c   : > { %s4716_s18 = scalar_select %p4320_p10, 1, 0 }
  0x1d   : > { %p3843_p12 = pneg %p4327_p11  ;;  %p3859_p0 = scmp.lt.s32.totalorder %s4173_s30, 4 }
  0x1e   : > { %4717 = sst [smem:[#allocation19_spill]] %s4716_s18  ;;  %s4688_s19 = smov 256  }
  0x1f   : > { %s371_s23 = sshll.u32 %s4718_s3, 4  ;;  %p4335_p13 = pnand %p3843_p12, %p210_p3  ;;  %s372_s23 = int_to_ptr.hbm [resolvable:$true] %s371_s23 }
  0x20   : > { %s4689_s20 = smov 16   ;;  %p4347_p1 = pnand %p3859_p0, %p4304_p4 }
  0x21   : > { %3846 = dma.hbm_to_vmem [thread:$0]  (!%p4335_p13), %s372_s23, 8192, %s374_s12, [#allocation3], %s4688_s19, %s4688_s19, %s4689_s20  }
  0x22   : > { %s37_s14 = sadd.s32 1, %s4169_s29  ;;  %s34_s18 = sadd.s32 1, %s4165_s28 }
  0x23   : > { %p35_p2 = scmp.ge.s32.totalorder %s34_s18, 2  ;;  %s416_s21 = sand.u32 1, %s4173_s30  }
  0x24   : > { %s418_s10 = sand.u32 1, %s4153_s25   ;;  %s2788_s15 = sshll.u32 %s4169_s29, 2 }
  0x25   : > { %s4757_s18 = smov (%p35_p2, %s34_s18), 0  ;;  %s4759_s14 = smov (!%p35_p2, %s37_s14), %s4169_s29 }
  0x26   : > { %4722 = sst [smem:[#allocation20_spill]] %s4757_s18  ;;  %s297_s6 = ssub.s32 %s4165_s28, %s4757_s18 }
  0x27   : > { %s4360_s12 = sshll.u32 %s418_s10, 8  ;;  %p39_p4 = scmp.ge.s32.totalorder %s4759_s14, 2 }
  0x28   : > { %s420_s23 = scalar_lea.vmem [#allocation6], %s4360_s12  ;;  %s4724_s7 = sld [smem:[#allocation28_spill]] }
  0x29   : > { %s427_s19 = sshll.u32 %s420_s23, 4  ;;  %s4761_s14 = smov (%p39_p4, %s4759_s14), 0  ;;  %s428_s19 = int_to_ptr.vmem [resolvable:$true] %s427_s19 }
  0x2a   : > { %4723 = sst [smem:[#allocation21_spill]] %s4761_s14  ;;  %s193_s8 = ssub.s32 %s4169_s29, %s4761_s14 }
  0x2b   : > { %p194_p6 = scmp.eq.s32.totalorder %s193_s8, 0  ;;  %s299_s28 = sor.u32 %s297_s6, %s193_s8 }
  0x2c   : > { %p300_p7 = scmp.eq.s32.totalorder %s299_s28, 0  ;;  %s4725_s10 = sadd.s32 1, %s4153_s25 }
  0x2d   : > { %s4374_s27 = scalar_select %p194_p6, %s4153_s25, %s4725_s10  }
  0x2e   : > { %s424_s4 = scalar_lea.hbm %s4724_s7, %s2788_s15  ;;  %s4727_s23 = sadd.s32 1, %s4141_s22 }
  0x2f   : > { %s425_s18 = sshll.u32 %s424_s4, 4  ;;  %4726 = sst [smem:[#allocation22_spill]] %s4374_s27  ;;  %s426_s18 = int_to_ptr.hbm [resolvable:$true] %s425_s18 }
  0x30   : > { %s4379_s2 = scalar_select %p300_p7, %s4141_s22, %s4727_s23  }
  0x31   : > { %s388_s20 = sshll.u32 %s4677_s5, 4  ;;  %s417_s7 = scalar_lea.sflag [#allocation3], %s416_s21  ;;  %s389_s20 = int_to_ptr.hbm [resolvable:$true] %s388_s20 }
  0x32   : > { %s4178_s14 = smov 128   ;;  %s4179_s4 = smov 64  }
  0x33   : > { %s4180_s29 = smov 4   ;;  %s4181_s6 = smov [#allocation4]  }
  0x34   : > { %3853 = dma.hbm_to_vmem [thread:$0]  (!%p4347_p1), %s426_s18, 4096, %s428_s19, %s417_s7, %s4178_s14, %s4179_s4, %s4180_s29  }
  0x35   : > { %s390_s8 = sshll.u32 %s4181_s6, 4  ;;  %s451_s23 = scalar_lea.hbm %s4681_s9, %s2788_s15  ;;  %s391_s8 = int_to_ptr.vmem [resolvable:$true] %s390_s8 }
  0x36   : > { %s4728_s27 = smov 16   ;;  %s4729_s25 = smov 256  }
  0x37   : > { %3849 = dma.hbm_to_vmem [thread:$0]  (!%p4335_p13), %s389_s20, 8192, %s391_s8, [#allocation5], %s4729_s25, %s4729_s25, %s4728_s27  }
  0x38   : > { %s452_s0 = sshll.u32 %s451_s23, 4  ;;  %s447_s21 = scalar_lea.vmem [#allocation7], %s4360_s12  ;;  %s453_s0 = int_to_ptr.hbm [resolvable:$true] %s452_s0 }
  0x39   : > { %s454_s30 = sshll.u32 %s447_s21, 4  ;;  %472 = sbr.rel (%p4327_p11) target bundleno = 626 (0x272), region = 64  ;;  %s455_s30 = int_to_ptr.vmem [resolvable:$true] %s454_s30 }
  0x3a   : > { %3856 = dma.hbm_to_vmem [thread:$0]  (!%p4347_p1), %s453_s0, 4096, %s455_s30, %s417_s7, %s4178_s14, %s4179_s4, %s4180_s29  }
  0x3e   : > { %4124 = dma.done.wait (%p210_p3), [#allocation3], 8192  }
  0x3f   : > { %4126 = vsyncadd (%p210_p3), [#allocation3], 4294959104 }
  0x40   : > { %4128 = dma.done.wait (%p210_p3), [#allocation5], 8192  }
  0x41   : > { %4130 = vsyncadd (%p210_p3), [#allocation5], 4294959104  ;;  %s484_s3 = sand.u32 1, %s4296_s13   ;;  %s486_s7 = sand.u32 1, %s4149_s24  }
  0x42   : > { %s4409_s11 = sshll.u32 %s486_s7, 8  ;;  %s485_s25 = scalar_lea.sflag [#allocation3], %s484_s3 }
  0x43   : > { %s4412_s27 = scalar_lea.vmem [#allocation6], %s4409_s11 }
  0x44   : > { %4132 = dma.done.wait (%p4311_p5), %s485_s25, 8192  }
  0x45   : > { %4134 = vsyncadd (%p4311_p5), %s485_s25, 4294959104  ;;  %s2798_s29 = sshll.u32 %s4157_s26, 1  ;;  %v2822_v0 = vld [vmem:[%s4673_s1 + $0x20] sm:$0xf]  ;;  %v3625_v1 = vld [vmem:[%s4673_s1 + $0x2c] sm:$0xf0] }
  0x46   : > { %p560_p8 = scmp.lt.s32.totalorder %s2798_s29, 3  ;;  %v3623_v2 = vld [vmem:[%s4673_s1 + $0x24] sm:$0xf]  ;;  %v2823_v3 = vor.u32 %v3625_v1, %v2822_v0  ;;  %v2824_v4 = vld [vmem:[%s4673_s1 + $0x30] sm:$0xf0]  ;;  %s4730_s0 = sld [smem:[#allocation23_spill]] }
  0x47   : > { %v2806_v5 = vld [vmem:[%s4673_s1] sm:$0xf]  ;;  %v3621_v6 = vld [vmem:[%s4673_s1 + $0xc] sm:$0xf0]  ;;  %v2827_v7 = vor.u32 %v3623_v2, %v2824_v4  ;;  %v3619_v8 = vld [vmem:[%s4673_s1 + $0x4] sm:$0xf] }
  0x48   : > { %s4763_s29 = smov (!%p560_p8, %s2798_s29), 3  ;;  %v2808_v9 = vld [vmem:[%s4673_s1 + $0x10] sm:$0xf0]  ;;  %vm639_vm0 = vcmask 261120   ;;  %649 = vmatpush.bf16.msra.mxu0 %v2823_v3  ;;  %v2807_v10 = vor.u32 %v3621_v6, %v2806_v5  ;;  %v2830_v11 = vld [vmem:[%s4673_s1 + $0x28] sm:$0xf] }
  0x49   : > { %s2799_s16 = sshll.u32 %s4763_s29, 2  ;;  %v3626_v12 = vld [vmem:[%s4673_s1 + $0x34] sm:$0xf0]  ;;  %v3624_v13 = vld [vmem:[%s4673_s1 + $0x2c] sm:$0xf]  ;;  %663 = vmatpush.bf16.msra.mxu1 %v2827_v7  ;;  %v2811_v14 = vor.u32 %v3619_v8, %v2808_v9  ;;  %s4731_s30 = sld [smem:[#allocation24_spill]] }
  0x4a   : > { %v2831_v16 = vor.u32 %v3626_v12, %v2830_v11  ;;  %v2832_v17 = vld [vmem:[%s4673_s1 + $0x38] sm:$0xf0]  ;;  %v2814_v18 = vld [vmem:[%s4673_s1 + $0x8] sm:$0xf]  ;;  %v3622_v19 = vld [vmem:[%s4673_s1 + $0x14] sm:$0xf0] }
  0x4b   : > { %v2835_v20 = vor.u32 %v3624_v13, %v2832_v17  ;;  %v3620_v21 = vld [vmem:[%s4673_s1 + $0xc] sm:$0xf]  ;;  %v2816_v22 = vld [vmem:[%s4673_s1 + $0x18] sm:$0xf0]  ;;  %v2954_v23 = vld [vmem:[#allocation2 + $0xe0] sm:$0xf]  ;;  %v2815_v24 = vor.u32 %v3622_v19, %v2814_v18 }
  0x4c   : > { %s563_s21 = scalar_lea.vmem %s4730_s0, %s2799_s16  ;;  %677 = vmatpush.bf16.msra.mxu2 %v2831_v16  ;;  %v3657_v25 = vld [vmem:[#allocation2 + $0xec] sm:$0xf0]  ;;  %v3082_v26 = vld [vmem:[#allocation2 + $0x1e0] sm:$0xf]  ;;  %650 = vmatpush.bf16.msra.mxu0 %v2807_v10  ;;  %v2819_v28 = vor.u32 %v3620_v21, %v2816_v22  ;;  %v3655_v31 = vld [vmem:[#allocation2 + $0xe4] sm:$0xf] }
  0x4d   : > { %v3618_v15 = vld [vmem:[%s563_s21] sm:$0xff]  ;;  %v3689_v27 = vld [vmem:[#allocation2 + $0x1ec] sm:$0xf0]  ;;  %691 = vmatpush.bf16.msra.mxu3 %v2835_v20  ;;  %v2955_v29 = vor.u32 %v3657_v25, %v2954_v23  ;;  %v2956_v32 = vld [vmem:[#allocation2 + $0xf0] sm:$0xf0]  ;;  %664 = vmatpush.bf16.msra.mxu1 %v2811_v14  ;;  %s4732_s3 = sld [smem:[#allocation15_spill]] }
  0x4e   : > { %v3083_v30 = vor.u32 %v3689_v27, %v3082_v26  ;;  %v3687_v33 = vld [vmem:[#allocation2 + $0x1e4] sm:$0xf]  ;;  %v2959_v34 = vor.u32 %v3655_v31, %v2956_v32  ;;  %v3084_v35 = vld [vmem:[#allocation2 + $0x1f0] sm:$0xf0]  ;;  %v2938_v36 = vld [vmem:[#allocation2 + $0xc0] sm:$0xf] }
  0x4f   : > { %v3653_v37 = vld [vmem:[#allocation2 + $0xcc] sm:$0xf0]  ;;  %v3087_v38 = vor.u32 %v3687_v33, %v3084_v35  ;;  %v3066_v40 = vld [vmem:[#allocation2 + $0x1c0] sm:$0xf]  ;;  %v3651_v42 = vld [vmem:[#allocation2 + $0xc4] sm:$0xf]  ;;  %2836 = vmatmul.msk.bf16.vlgmr.msra.gmra.mxu0 %vm639_vm0, %v3618_v15 }
  0x50   : > { %1131 = vmatpush.bf16.msrb.mxu0 %v2955_v29  ;;  %v2939_v39 = vor.u32 %v3653_v37, %v2938_v36  ;;  %v3685_v41 = vld [vmem:[#allocation2 + $0x1cc] sm:$0xf0]  ;;  %678 = vmatpush.bf16.msra.mxu2 %v2815_v24  ;;  %v2940_v44 = vld [vmem:[#allocation2 + $0xd0] sm:$0xf0]  ;;  %v3683_v45 = vld [vmem:[#allocation2 + $0x1c4] sm:$0xf] }
  0x51   : > { %1145 = vmatpush.bf16.msrb.mxu1 %v3083_v30  ;;  %v3067_v43 = vor.u32 %v3685_v41, %v3066_v40  ;;  %v3068_v46 = vld [vmem:[#allocation2 + $0x1d0] sm:$0xf0]  ;;  %692 = vmatpush.bf16.msra.mxu3 %v2819_v28  ;;  %v2922_v47 = vld [vmem:[#allocation2 + $0xa0] sm:$0xf]  ;;  %v3649_v48 = vld [vmem:[#allocation2 + $0xac] sm:$0xf0]  ;;  %v2943_v50 = vor.u32 %v3651_v42, %v2940_v44 }
  0x52   : > { %2837 = vmatmul.msk.bf16.vlgmr.msra.gmra.mxu1 %vm639_vm0, %v3618_v15  ;;  %v3050_v49 = vld [vmem:[#allocation2 + $0x1a0] sm:$0xf]  ;;  %v3071_v51 = vor.u32 %v3683_v45, %v3068_v46  ;;  %v3681_v52 = vld [vmem:[#allocation2 + $0x1ac] sm:$0xf0]  ;;  %v3647_v53 = vld [vmem:[#allocation2 + $0xa4] sm:$0xf]  ;;  %v2923_v54 = vor.u32 %v3649_v48, %v2922_v47 }
  0x53   : > { %2838 = vmatmul.msk.bf16.vlgmr.msra.gmra.mxu2 %vm639_vm0, %v3618_v15  ;;  %v2924_v55 = vld [vmem:[#allocation2 + $0xb0] sm:$0xf0]  ;;  %v3679_v56 = vld [vmem:[#allocation2 + $0x1a4] sm:$0xf]  ;;  %v3051_v58 = vor.u32 %v3681_v52, %v3050_v49  ;;  %v2906_v59 = vld [vmem:[#allocation2 + $0x80] sm:$0xf] }
  0x54   : > { %1159 = vmatpush.bf16.msrb.mxu2 %v2959_v34  ;;  %1132 = vmatpush.bf16.msrb.mxu0 %v2939_v39  ;;  %v3052_v57 = vld [vmem:[#allocation2 + $0x1b0] sm:$0xf0]  ;;  %v3645_v60 = vld [vmem:[#allocation2 + $0x8c] sm:$0xf0]  ;;  %v3034_v61 = vld [vmem:[#allocation2 + $0x180] sm:$0xf]  ;;  %v2927_v63 = vor.u32 %v3647_v53, %v2924_v55 }
  0x55   : > { %1173 = vmatpush.bf16.msrb.mxu3 %v3087_v38  ;;  %1146 = vmatpush.bf16.msrb.mxu1 %v3067_v43  ;;  %v3677_v62 = vld [vmem:[#allocation2 + $0x18c] sm:$0xf0]  ;;  %v3055_v0 = vor.u32 %v3679_v56, %v3052_v57  ;;  %v3643_v1 = vld [vmem:[#allocation2 + $0x84] sm:$0xf]  ;;  %v2907_v2 = vor.u32 %v3645_v60, %v2906_v59  ;;  %v2908_v3 = vld [vmem:[#allocation2 + $0x90] sm:$0xf0] }
  0x56   : > { %2839 = vmatmul.msk.bf16.vlgmr.msra.gmra.mxu3 %vm639_vm0, %v3618_v15  ;;  %v3675_v4 = vld [vmem:[#allocation2 + $0x184] sm:$0xf]  ;;  %v3036_v5 = vld [vmem:[#allocation2 + $0x190] sm:$0xf0]  ;;  %v3035_v6 = vor.u32 %v3677_v62, %v3034_v61  ;;  %v2890_v7 = vld [vmem:[#allocation2 + $0x60] sm:$0xf]  ;;  %v2911_v11 = vor.u32 %v3643_v1, %v2908_v3 }
  0x57   : > { %v3641_v8 = vld [vmem:[#allocation2 + $0x6c] sm:$0xf0]  ;;  %v3018_v9 = vld [vmem:[#allocation2 + $0x160] sm:$0xf]  ;;  %v3039_v12 = vor.u32 %v3675_v4, %v3036_v5  ;;  %v3639_v13 = vld [vmem:[#allocation2 + $0x64] sm:$0xf] }
  0x58   : > { %1160 = vmatpush.bf16.msrb.mxu2 %v2943_v50  ;;  %1133 = vmatpush.bf16.msrb.mxu0 %v2923_v54  ;;  %v3673_v10 = vld [vmem:[#allocation2 + $0x16c] sm:$0xf0]  ;;  %v2891_v14 = vor.u32 %v3641_v8, %v2890_v7  ;;  %v2892_v15 = vld [vmem:[#allocation2 + $0x70] sm:$0xf0]  ;;  %v3671_v16 = vld [vmem:[#allocation2 + $0x164] sm:$0xf] }
  0x59   : > { %1174 = vmatpush.bf16.msrb.mxu3 %v3071_v51  ;;  %1147 = vmatpush.bf16.msrb.mxu1 %v3051_v58  ;;  %v3020_v17 = vld [vmem:[#allocation2 + $0x170] sm:$0xf0]  ;;  %v3019_v18 = vor.u32 %v3673_v10, %v3018_v9  ;;  %v2874_v19 = vld [vmem:[#allocation2 + $0x40] sm:$0xf]  ;;  %v3637_v20 = vld [vmem:[#allocation2 + $0x4c] sm:$0xf0]  ;;  %v2895_v23 = vor.u32 %v3639_v13, %v2892_v15 }
  0x5a   : > { %v3002_v21 = vld [vmem:[#allocation2 + $0x140] sm:$0xf]  ;;  %v3669_v22 = vld [vmem:[#allocation2 + $0x14c] sm:$0xf0]  ;;  %v3023_v24 = vor.u32 %v3671_v16, %v3020_v17  ;;  %v3635_v25 = vld [vmem:[#allocation2 + $0x44] sm:$0xf]  ;;  %v2875_v26 = vor.u32 %v3637_v20, %v2874_v19 }
  0x5b   : > { %v2876_v27 = vld [vmem:[#allocation2 + $0x50] sm:$0xf0]  ;;  %v3667_v28 = vld [vmem:[#allocation2 + $0x144] sm:$0xf]  ;;  %v3003_v30 = vor.u32 %v3669_v22, %v3002_v21  ;;  %v2858_v31 = vld [vmem:[#allocation2 + $0x20] sm:$0xf] }
  0x5c   : > { %1161 = vmatpush.bf16.msrb.mxu2 %v2927_v63  ;;  %1134 = vmatpush.bf16.msrb.mxu0 %v2907_v2  ;;  %v3004_v29 = vld [vmem:[#allocation2 + $0x150] sm:$0xf0]  ;;  %v3633_v32 = vld [vmem:[#allocation2 + $0x2c] sm:$0xf0]  ;;  %v2986_v33 = vld [vmem:[#allocation2 + $0x120] sm:$0xf]  ;;  %v2879_v35 = vor.u32 %v3635_v25, %v2876_v27 }
  0x5d   : > { %1175 = vmatpush.bf16.msrb.mxu3 %v3055_v0  ;;  %1148 = vmatpush.bf16.msrb.mxu1 %v3035_v6  ;;  %v3665_v34 = vld [vmem:[#allocation2 + $0x12c] sm:$0xf0]  ;;  %v3007_v36 = vor.u32 %v3667_v28, %v3004_v29  ;;  %v3631_v37 = vld [vmem:[#allocation2 + $0x24] sm:$0xf]  ;;  %v2860_v38 = vld [vmem:[#allocation2 + $0x30] sm:$0xf0]  ;;  %v2859_v39 = vor.u32 %v3633_v32, %v2858_v31 }
  0x5e   : > { %v3663_v40 = vld [vmem:[#allocation2 + $0x124] sm:$0xf]  ;;  %v2988_v41 = vld [vmem:[#allocation2 + $0x130] sm:$0xf0]  ;;  %v2842_v42 = vld [vmem:[#allocation2] sm:$0xf]  ;;  %v2987_v43 = vor.u32 %v3665_v34, %v2986_v33  ;;  %v2863_v50 = vor.u32 %v3631_v37, %v2860_v38 }
  0x5f   : > { %v3629_v44 = vld [vmem:[#allocation2 + $0xc] sm:$0xf0]  ;;  %v2970_v45 = vld [vmem:[#allocation2 + $0x100] sm:$0xf]  ;;  %v3627_v47 = vld [vmem:[#allocation2 + $0x4] sm:$0xf]  ;;  %v2991_v51 = vor.u32 %v3663_v40, %v2988_v41 }
  0x60   : > { %1162 = vmatpush.bf16.msrb.mxu2 %v2911_v11  ;;  %1135 = vmatpush.bf16.msrb.mxu0 %v2891_v14  ;;  %v3661_v46 = vld [vmem:[#allocation2 + $0x10c] sm:$0xf0]  ;;  %v2962_v48 = vld [vmem:[#allocation2 + $0xe8] sm:$0xf]  ;;  %v3658_v49 = vld [vmem:[#allocation2 + $0xf4] sm:$0xf0]  ;;  %v2843_v55 = vor.u32 %v3629_v44, %v2842_v42 }
  0x61   : > { %1176 = vmatpush.bf16.msrb.mxu3 %v3039_v12  ;;  %1149 = vmatpush.bf16.msrb.mxu1 %v3019_v18  ;;  %v2844_v52 = vld [vmem:[#allocation2 + $0x10] sm:$0xf0]  ;;  %v3090_v53 = vld [vmem:[#allocation2 + $0x1e8] sm:$0xf]  ;;  %v3690_v54 = vld [vmem:[#allocation2 + $0x1f4] sm:$0xf0]  ;;  %v2971_v59 = vor.u32 %v3661_v46, %v2970_v45  ;;  %v2963_v60 = vor.u32 %v3658_v49, %v2962_v48 }
  0x62   : > { %v3659_v56 = vld [vmem:[#allocation2 + $0x104] sm:$0xf]  ;;  %v2972_v57 = vld [vmem:[#allocation2 + $0x110] sm:$0xf0]  ;;  %v3656_v58 = vld [vmem:[#allocation2 + $0xec] sm:$0xf]  ;;  %v3091_v0 = vor.u32 %v3690_v54, %v3090_v53  ;;  %v2847_v3 = vor.u32 %v3627_v47, %v2844_v52 }
  0x63   : > { %v2964_v61 = vld [vmem:[#allocation2 + $0xf8] sm:$0xf0]  ;;  %v3688_v62 = vld [vmem:[#allocation2 + $0x1ec] sm:$0xf]  ;;  %v2946_v1 = vld [vmem:[#allocation2 + $0xc8] sm:$0xf]  ;;  %v2975_v4 = vor.u32 %v3659_v56, %v2972_v57 }
  0x64   : > { %1163 = vmatpush.bf16.msrb.mxu2 %v2895_v23  ;;  %1136 = vmatpush.bf16.msrb.mxu0 %v2875_v26  ;;  %v3092_v63 = vld [vmem:[#allocation2 + $0x1f8] sm:$0xf0]  ;;  %v3654_v2 = vld [vmem:[#allocation2 + $0xd4] sm:$0xf0]  ;;  %v3074_v5 = vld [vmem:[#allocation2 + $0x1c8] sm:$0xf]  ;;  %v2967_v7 = vor.u32 %v3656_v58, %v2964_v61 }
  0x65   : > { %1177 = vmatpush.bf16.msrb.mxu3 %v3023_v24  ;;  %1150 = vmatpush.bf16.msrb.mxu1 %v3003_v30  ;;  %v3686_v6 = vld [vmem:[#allocation2 + $0x1d4] sm:$0xf0]  ;;  %v3095_v8 = vor.u32 %v3688_v62, %v3092_v63  ;;  %v3652_v9 = vld [vmem:[#allocation2 + $0xcc] sm:$0xf]  ;;  %v2947_v10 = vor.u32 %v3654_v2, %v2946_v1  ;;  %v2948_v11 = vld [vmem:[#allocation2 + $0xd8] sm:$0xf0] }
  0x66   : > { %v3684_v12 = vld [vmem:[#allocation2 + $0x1cc] sm:$0xf]  ;;  %v3076_v13 = vld [vmem:[#allocation2 + $0x1d8] sm:$0xf0]  ;;  %v3075_v14 = vor.u32 %v3686_v6, %v3074_v5  ;;  %v2930_v15 = vld [vmem:[#allocation2 + $0xa8] sm:$0xf]  ;;  %v2951_v19 = vor.u32 %v3652_v9, %v2948_v11 }
  0x67   : > { %v3650_v16 = vld [vmem:[#allocation2 + $0xb4] sm:$0xf0]  ;;  %v3058_v17 = vld [vmem:[#allocation2 + $0x1a8] sm:$0xf]  ;;  %v3079_v20 = vor.u32 %v3684_v12, %v3076_v13  ;;  %v3648_v21 = vld [vmem:[#allocation2 + $0xac] sm:$0xf] }
  0x68   : > { %1164 = vmatpush.bf16.msrb.mxu2 %v2879_v35  ;;  %1137 = vmatpush.bf16.msrb.mxu0 %v2859_v39  ;;  %v3682_v18 = vld [vmem:[#allocation2 + $0x1b4] sm:$0xf0]  ;;  %v2931_v22 = vor.u32 %v3650_v16, %v2930_v15  ;;  %v2932_v23 = vld [vmem:[#allocation2 + $0xb8] sm:$0xf0]  ;;  %v3680_v24 = vld [vmem:[#allocation2 + $0x1ac] sm:$0xf] }
  0x69   : > { %1178 = vmatpush.bf16.msrb.mxu3 %v3007_v36  ;;  %1151 = vmatpush.bf16.msrb.mxu1 %v2987_v43  ;;  %v3060_v25 = vld [vmem:[#allocation2 + $0x1b8] sm:$0xf0]  ;;  %v3059_v26 = vor.u32 %v3682_v18, %v3058_v17  ;;  %v2935_v27 = vor.u32 %v3648_v21, %v2932_v23  ;;  %v2914_v29 = vld [vmem:[#allocation2 + $0x88] sm:$0xf]  ;;  %v3646_v30 = vld [vmem:[#allocation2 + $0x94] sm:$0xf0] }
  0x6a   : > { %v3063_v28 = vor.u32 %v3680_v24, %v3060_v25  ;;  %v3042_v31 = vld [vmem:[#allocation2 + $0x188] sm:$0xf]  ;;  %v2915_v32 = vor.u32 %v3646_v30, %v2914_v29  ;;  %v3678_v33 = vld [vmem:[#allocation2 + $0x194] sm:$0xf0]  ;;  %v3644_v34 = vld [vmem:[#allocation2 + $0x8c] sm:$0xf] }
  0x6b   : > { %v2916_v35 = vld [vmem:[#allocation2 + $0x98] sm:$0xf0]  ;;  %v3043_v36 = vor.u32 %v3678_v33, %v3042_v31  ;;  %v3676_v38 = vld [vmem:[#allocation2 + $0x18c] sm:$0xf]  ;;  %v2898_v41 = vld [vmem:[#allocation2 + $0x68] sm:$0xf] }
  0x6c   : > { %1165 = vmatpush.bf16.msrb.mxu2 %v2863_v50  ;;  %1138 = vmatpush.bf16.msrb.mxu0 %v2843_v55  ;;  %v2919_v37 = vor.u32 %v3644_v34, %v2916_v35  ;;  %v3044_v39 = vld [vmem:[#allocation2 + $0x198] sm:$0xf0]  ;;  %v3642_v42 = vld [vmem:[#allocation2 + $0x74] sm:$0xf0]  ;;  %v3026_v43 = vld [vmem:[#allocation2 + $0x168] sm:$0xf] }
  0x6d   : > { %1179 = vmatpush.bf16.msrb.mxu3 %v2991_v51  ;;  %1152 = vmatpush.bf16.msrb.mxu1 %v2971_v59  ;;  %v3047_v40 = vor.u32 %v3676_v38, %v3044_v39  ;;  %v2899_v44 = vor.u32 %v3642_v42, %v2898_v41  ;;  %v3674_v45 = vld [vmem:[#allocation2 + $0x174] sm:$0xf0]  ;;  %v3640_v46 = vld [vmem:[#allocation2 + $0x6c] sm:$0xf]  ;;  %v2900_v47 = vld [vmem:[#allocation2 + $0x78] sm:$0xf0] }
  0x6e   : > { %v3027_v48 = vor.u32 %v3674_v45, %v3026_v43  ;;  %v2903_v49 = vor.u32 %v3640_v46, %v2900_v47  ;;  %v3672_v50 = vld [vmem:[#allocation2 + $0x16c] sm:$0xf]  ;;  %v3028_v51 = vld [vmem:[#allocation2 + $0x178] sm:$0xf0]  ;;  %v2882_v53 = vld [vmem:[#allocation2 + $0x48] sm:$0xf] }
  0x6f   : > { %v3031_v52 = vor.u32 %v3672_v50, %v3028_v51  ;;  %v3638_v54 = vld [vmem:[#allocation2 + $0x54] sm:$0xf0]  ;;  %v3010_v55 = vld [vmem:[#allocation2 + $0x148] sm:$0xf]  ;;  %v3636_v58 = vld [vmem:[#allocation2 + $0x4c] sm:$0xf] }
  0x70   : > { %1187 = vmatpush.bf16.msra.mxu0 %v2963_v60  ;;  %1166 = vmatpush.bf16.msrb.mxu2 %v2847_v3  ;;  %v2883_v56 = vor.u32 %v3638_v54, %v2882_v53  ;;  %v3670_v57 = vld [vmem:[#allocation2 + $0x154] sm:$0xf0]  ;;  %v2884_v59 = vld [vmem:[#allocation2 + $0x58] sm:$0xf0]  ;;  %v3668_v62 = vld [vmem:[#allocation2 + $0x14c] sm:$0xf] }
  0x71   : > { %1201 = vmatpush.bf16.msra.mxu1 %v3091_v0  ;;  %1180 = vmatpush.bf16.msrb.mxu3 %v2975_v4  ;;  %v3011_v60 = vor.u32 %v3670_v57, %v3010_v55  ;;  %v2887_v61 = vor.u32 %v3636_v58, %v2884_v59  ;;  %v3012_v63 = vld [vmem:[#allocation2 + $0x158] sm:$0xf0]  ;;  %v2866_v1 = vld [vmem:[#allocation2 + $0x28] sm:$0xf]  ;;  %v3634_v2 = vld [vmem:[#allocation2 + $0x34] sm:$0xf0] }
  0x72   : > { %v3015_v0 = vor.u32 %v3668_v62, %v3012_v63  ;;  %v2994_v3 = vld [vmem:[#allocation2 + $0x128] sm:$0xf]  ;;  %v2867_v4 = vor.u32 %v3634_v2, %v2866_v1  ;;  %v3666_v5 = vld [vmem:[#allocation2 + $0x134] sm:$0xf0]  ;;  %v3632_v6 = vld [vmem:[#allocation2 + $0x2c] sm:$0xf] }
  0x73   : > { %v2996_v11 = vld [vmem:[#allocation2 + $0x138] sm:$0xf0]  ;;  %v2850_v13 = vld [vmem:[#allocation2 + $0x8] sm:$0xf]  ;;  %v3662_v17 = vld [vmem:[#allocation2 + $0x114] sm:$0xf0] }
  0x74   : > { %1215 = vmatpush.bf16.msra.mxu2 %v2967_v7  ;;  %1188 = vmatpush.bf16.msra.mxu0 %v2947_v10  ;;  %v2868_v7 = vld [vmem:[#allocation2 + $0x38] sm:$0xf0]  ;;  %v3664_v10 = vld [vmem:[#allocation2 + $0x12c] sm:$0xf]  ;;  %v2978_v15 = vld [vmem:[#allocation2 + $0x108] sm:$0xf] }
  0x75   : > { %1229 = vmatpush.bf16.msra.mxu3 %v3095_v8  ;;  %1202 = vmatpush.bf16.msra.mxu1 %v3075_v14  ;;  %v2995_v8 = vor.u32 %v3666_v5, %v2994_v3  ;;  %v2871_v9 = vor.u32 %v3632_v6, %v2868_v7  ;;  %v2999_v12 = vor.u32 %v3664_v10, %v2996_v11  ;;  %v3630_v14 = vld [vmem:[#allocation2 + $0x14] sm:$0xf0]  ;;  %v3628_v18 = vld [vmem:[#allocation2 + $0xc] sm:$0xf]  ;;  %v2980_v23 = vld [vmem:[#allocation2 + $0x118] sm:$0xf0] }
  0x76   : > { %v2851_v16 = vor.u32 %v3630_v14, %v2850_v13  ;;  %v4477_v25 = vld [vmem:[%s4731_s30] sm:$0xf]  ;;  %v3721_v47 = vld [vmem:[#allocation4 + $0xec] sm:$0xf0]  ;;  %v3719_v50 = vld [vmem:[#allocation4 + $0xe4] sm:$0xf] }
  0x77   : > { %v3210_v46 = vld [vmem:[#allocation4 + $0xe0] sm:$0xf]  ;;  %v3212_v55 = vld [vmem:[#allocation4 + $0xf0] sm:$0xf0]  ;;  %v3717_v63 = vld [vmem:[#allocation4 + $0xcc] sm:$0xf0] }
  0x78   : > { %1216 = vmatpush.bf16.msra.mxu2 %v2951_v19  ;;  %1189 = vmatpush.bf16.msra.mxu0 %v2931_v22  ;;  %v2852_v19 = vld [vmem:[#allocation2 + $0x18] sm:$0xf0]  ;;  %v3660_v22 = vld [vmem:[#allocation2 + $0x10c] sm:$0xf]  ;;  %v3340_v57 = vld [vmem:[#allocation4 + $0x1f0] sm:$0xf0]  ;;  %v3215_v2 = vor.u32 %v3719_v50, %v3212_v55 }
  0x79   : > { %1230 = vmatpush.bf16.msra.mxu3 %v3079_v20  ;;  %1203 = vmatpush.bf16.msra.mxu1 %v3059_v26  ;;  %v2979_v20 = vor.u32 %v3662_v17, %v2978_v15  ;;  %v2855_v21 = vor.u32 %v3628_v18, %v2852_v19  ;;  %v2983_v24 = vor.u32 %v3660_v22, %v2980_v23  ;;  %v586_v26 = vperm.slane %v4477_v25, 0  ;;  %v3194_v62 = vld [vmem:[#allocation4 + $0xc0] sm:$0xf]  ;;  %v3749_v5 = vld [vmem:[#allocation4 + $0x1cc] sm:$0xf0]  ;;  %p565_p3 = scmp.lt.s32.totalorder %s4732_s3, 1 }
  0x7a   : > { %v3715_v6 = vld [vmem:[#allocation4 + $0xc4] sm:$0xf]  ;;  %v3196_v7 = vld [vmem:[#allocation4 + $0xd0] sm:$0xf0]  ;;  %v3195_v10 = vor.u32 %v3717_v63, %v3194_v62  ;;  %v3713_v13 = vld [vmem:[#allocation4 + $0xac] sm:$0xf0] }
  0x7b   : > { %v3199_v14 = vor.u32 %v3715_v6, %v3196_v7  ;;  %v3745_v17 = vld [vmem:[#allocation4 + $0x1ac] sm:$0xf0]  ;;  %v3711_v18 = vld [vmem:[#allocation4 + $0xa4] sm:$0xf]  ;;  %v3180_v19 = vld [vmem:[#allocation4 + $0xb0] sm:$0xf0] }
  0x7c   : > { %1217 = vmatpush.bf16.msra.mxu2 %v2935_v27  ;;  %1190 = vmatpush.bf16.msra.mxu0 %v2915_v32  ;;  %v587_v27 = vperm.slane %v4477_v25, 1  ;;  %v588_v22 = vperm.slane %v4477_v25, 2  ;;  %v589_v23 = vperm.slane %v4477_v25, 3  ;;  %v3735_v50 = vld [vmem:[#allocation4 + $0x164] sm:$0xf]  ;;  %s4765_s3 = smov (!%p565_p3, %s4732_s3), 1 }
  0x7d   : > { %1231 = vmatpush.bf16.msra.mxu3 %v3063_v28  ;;  %1204 = vmatpush.bf16.msra.mxu1 %v3043_v36  ;;  %v3701_v55 = vld [vmem:[#allocation4 + $0x4c] sm:$0xf0]  ;;  %v3699_v62 = vld [vmem:[#allocation4 + $0x44] sm:$0xf]  ;;  %v3260_v7 = vld [vmem:[#allocation4 + $0x150] sm:$0xf0] }
  0x7e   : > { %v3731_v6 = vld [vmem:[#allocation4 + $0x144] sm:$0xf]  ;;  %s4733_s29 = sld [smem:[#allocation29_spill]]  ;;  %s4543_s13 = scalar_lea.vmem [#allocation7], %s4409_s11 }
  0x7f   : > { %s4735_s14 = sld [smem:[#allocation26_spill]] }
  0x80   : > { %1218 = vmatpush.bf16.msra.mxu2 %v2919_v37  ;;  %1191 = vmatpush.bf16.msra.mxu0 %v2899_v44  ;;  %s4736_s15 = sld [smem:[#allocation27_spill]] }
  0x81   : > { %1232 = vmatpush.bf16.msra.mxu3 %v3047_v40  ;;  %1205 = vmatpush.bf16.msra.mxu1 %v3027_v48  ;;  %v3338_v48 = vld [vmem:[#allocation4 + $0x1e0] sm:$0xf]  ;;  %s4737_s4 = sld [smem:[#allocation30_spill]] }
  0x82   : > { %s4738_s10 = sld [smem:[#allocation13_spill]] }
  0x84   : > { %1219 = vmatpush.bf16.msra.mxu2 %v2903_v49  ;;  %1192 = vmatpush.bf16.msra.mxu0 %v2883_v56  ;;  %v3753_v49 = vld [vmem:[#allocation4 + $0x1ec] sm:$0xf0]  ;;  %v3751_v56 = vld [vmem:[#allocation4 + $0x1e4] sm:$0xf]  ;;  %s567_s19 = scalar_lea.vmem %s4733_s29, %s4765_s3  ;;  %s4740_s29 = sld [smem:[#allocation15_spill]] (%p4320_p10) }
  0x85   : > { %1233 = vmatpush.bf16.msra.mxu3 %v3031_v52  ;;  %1206 = vmatpush.bf16.msra.mxu1 %v3011_v60  ;;  %v3211_v60 = vor.u32 %v3721_v47, %v3210_v46  ;;  %v3343_v3 = vor.u32 %v3751_v56, %v3340_v57  ;;  %v3737_v46 = vld [vmem:[#allocation4 + $0x16c] sm:$0xf0]  ;;  %v3703_v47 = vld [vmem:[#allocation4 + $0x64] sm:$0xf] }
  0x87   : > { %s570_s6 = scalar_lea.vmem %s4737_s4, %s4765_s3 }
  0x88   : > { %1220 = vmatpush.bf16.msra.mxu2 %v2887_v61  ;;  %1193 = vmatpush.bf16.msra.mxu0 %v2867_v4  ;;  %v3339_v61 = vor.u32 %v3753_v49, %v3338_v48  ;;  %v3322_v4 = vld [vmem:[#allocation4 + $0x1c0] sm:$0xf]  ;;  %v3148_v49 = vld [vmem:[#allocation4 + $0x70] sm:$0xf0]  ;;  %s550_s23 = sand.u32 1, %s4738_s10  }
  0x89   : > { %1234 = vmatpush.bf16.msra.mxu3 %v3015_v0  ;;  %1207 = vmatpush.bf16.msra.mxu1 %v2995_v8  ;;  %v3747_v8 = vld [vmem:[#allocation4 + $0x1c4] sm:$0xf]  ;;  %v3323_v11 = vor.u32 %v3749_v5, %v3322_v4  ;;  %s4614_s0 = sshll.u32 %s550_s23, 3 }
  0x8a   : > { %s4617_s21 = scalar_lea.vmem [#allocation8], %s4614_s0  ;;  %s558_s3 = scalar_lea.vmem [#allocation9], %s4614_s0 }
  0x8c   : > { %1221 = vmatpush.bf16.msra.mxu2 %v2871_v9  ;;  %1194 = vmatpush.bf16.msra.mxu0 %v2851_v16  ;;  %v3324_v9 = vld [vmem:[#allocation4 + $0x1d0] sm:$0xf0]  ;;  %v3306_v16 = vld [vmem:[#allocation4 + $0x1a0] sm:$0xf] }
  0x8d   : > { %1235 = vmatpush.bf16.msra.mxu3 %v2999_v12  ;;  %1208 = vmatpush.bf16.msra.mxu1 %v2979_v20  ;;  %v3178_v12 = vld [vmem:[#allocation4 + $0xa0] sm:$0xf]  ;;  %v3327_v15 = vor.u32 %v3747_v8, %v3324_v9  ;;  %v3743_v20 = vld [vmem:[#allocation4 + $0x1a4] sm:$0xf] }
  0x90   : > { %1222 = vmatpush.bf16.msra.mxu2 %v2855_v21  ;;  %v3308_v21 = vld [vmem:[#allocation4 + $0x1b0] sm:$0xf0] }
  0x91   : > { %1236 = vmatpush.bf16.msra.mxu3 %v2983_v24  ;;  %v3162_v24 = vld [vmem:[#allocation4 + $0x80] sm:$0xf] }
  0xcc   : > { %v652_v28 = vpop.f32.mrf.mxu0 }
  0xcd   : > { %v653_v30 = vadd.f32 %v652_v28, %v586_v26  ;;  %v3709_v28 = vld [vmem:[#allocation4 + $0x8c] sm:$0xf0] }
  0xcf   : > { %v666_v29 = vpop.f32.mrf.mxu1  ;;  %v707_v32 = vmul.f32 0.1, %v653_v30  ;;  %vm699_vm1 = vcmp.gt.f32.partialorder %v653_v30, 0.0 }
  0xd0   : > { %v667_v31 = vadd.f32 %v666_v29, %v587_v27  ;;  %v3290_v29 = vld [vmem:[#allocation4 + $0x180] sm:$0xf] }
  0xd1   : > { %v715_v37 = vsel %vm699_vm1, %v653_v30, %v707_v32  ;;  %v3741_v30 = vld [vmem:[#allocation4 + $0x18c] sm:$0xf0]  ;;  %v3311_v32 = vor.u32 %v3743_v20, %v3308_v21  ;;  %v3727_v20 = vld [vmem:[#allocation4 + $0x124] sm:$0xf]  ;;  %v3244_v21 = vld [vmem:[#allocation4 + $0x130] sm:$0xf0] }
  0xd2   : > { %v708_v33 = vmul.f32 0.1, %v667_v31  ;;  %vm700_vm2 = vcmp.gt.f32.partialorder %v667_v31, 0.0  ;;  %v3291_v25 = vor.u32 %v3741_v30, %v3290_v29  ;;  %v3226_v29 = vld [vmem:[#allocation4 + $0x100] sm:$0xf] }
  0xd3   : > { %v3725_v30 = vld [vmem:[#allocation4 + $0x10c] sm:$0xf0] }
  0xd4   : > { %v654_v34 = vpop.f32.mrf.mxu0  ;;  %v716_v38 = vsel %vm700_vm2, %v667_v31, %v708_v33  ;;  %v3183_v31 = vor.u32 %v3711_v18, %v3180_v19  ;;  %v3707_v33 = vld [vmem:[#allocation4 + $0x84] sm:$0xf]  ;;  %v3116_v19 = vld [vmem:[#allocation4 + $0x30] sm:$0xf0] }
  0xd5   : > { %v655_v35 = vadd.f32 %v654_v34, %v586_v26  ;;  %v723_v42 = vpack.c.bf16 %v716_v38, %v715_v37  ;;  %v3179_v26 = vor.u32 %v3713_v13, %v3178_v12  ;;  %v3164_v34 = vld [vmem:[#allocation4 + $0x90] sm:$0xf0]  ;;  %v3114_v13 = vld [vmem:[#allocation4 + $0x20] sm:$0xf]  ;;  %v3695_v18 = vld [vmem:[#allocation4 + $0x24] sm:$0xf] }
  0xd6   : > { %v680_v0 = vpop.f32.mrf.mxu2 }
  0xd7   : > { %v668_v36 = vpop.f32.mrf.mxu1  ;;  %vm703_vm3 = vcmp.gt.f32.partialorder %v655_v35, 0.0  ;;  %v711_v40 = vmul.f32 0.1, %v655_v35  ;;  %v803_v51 = vunpack.c.l.b16 %v723_v42  ;;  %v804_v52 = vunpack.c.h.b16 %v723_v42 }
  0xd8   : > { %v669_v39 = vadd.f32 %v668_v36, %v587_v27  ;;  %v3307_v27 = vor.u32 %v3745_v17, %v3306_v16  ;;  %v3292_v36 = vld [vmem:[#allocation4 + $0x190] sm:$0xf0]  ;;  %v681_v42 = vadd.f32 %v680_v0, %v588_v22  ;;  %v3242_v17 = vld [vmem:[#allocation4 + $0x120] sm:$0xf] }
  0xd9   : > { %v719_v43 = vsel %vm703_vm3, %v655_v35, %v711_v40  ;;  %v694_v1 = vpop.f32.mrf.mxu3  ;;  %v3739_v35 = vld [vmem:[#allocation4 + $0x184] sm:$0xf]  ;;  %v3146_v40 = vld [vmem:[#allocation4 + $0x60] sm:$0xf] }
  0xda   : > { %vm704_vm4 = vcmp.gt.f32.partialorder %v669_v39, 0.0  ;;  %v712_v41 = vmul.f32 0.1, %v669_v39  ;;  %v3295_v48 = vor.u32 %v3739_v35, %v3292_v36  ;;  %v709_v63 = vmul.f32 0.1, %v681_v42 }
  0xdb   : > { %vm701_vm5 = vcmp.gt.f32.partialorder %v681_v42, 0.0  ;;  %v3723_v35 = vld [vmem:[#allocation4 + $0x104] sm:$0xf]  ;;  %v3228_v36 = vld [vmem:[#allocation4 + $0x110] sm:$0xf0] }
  0xdc   : > { %v720_v44 = vsel %vm704_vm4, %v669_v39, %v712_v41  ;;  %v3163_v39 = vor.u32 %v3709_v28, %v3162_v24  ;;  %v3705_v41 = vld [vmem:[#allocation4 + $0x6c] sm:$0xf0] }
  0xdd   : > { %v725_v45 = vpack.c.bf16 %v720_v44, %v719_v43  ;;  %v695_v43 = vadd.f32 %v694_v1, %v589_v23  ;;  %v3167_v44 = vor.u32 %v3707_v33, %v3164_v34  ;;  %v3147_v56 = vor.u32 %v3705_v41, %v3146_v40  ;;  %v3693_v28 = vld [vmem:[#allocation4 + $0xc] sm:$0xf0]  ;;  %v3691_v33 = vld [vmem:[#allocation4 + $0x4] sm:$0xf]  ;;  %v3100_v34 = vld [vmem:[#allocation4 + $0x10] sm:$0xf0] }
  0xde   : > { %v682_v37 = vpop.f32.mrf.mxu2  ;;  %v3151_v1 = vor.u32 %v3703_v47, %v3148_v49  ;;  %v3346_v40 = vld [vmem:[#allocation4 + $0x1e8] sm:$0xf]  ;;  %v3754_v41 = vld [vmem:[#allocation4 + $0x1f4] sm:$0xf0]  ;;  %v3220_v47 = vld [vmem:[#allocation4 + $0xf8] sm:$0xf0] }
  0xdf   : > { %v805_v53 = vunpack.c.l.b16 %v725_v45  ;;  %v806_v54 = vunpack.c.h.b16 %v725_v45  ;;  %v3274_v45 = vld [vmem:[#allocation4 + $0x160] sm:$0xf]  ;;  %v710_v0 = vmul.f32 0.1, %v695_v43  ;;  %vm702_vm6 = vcmp.gt.f32.partialorder %v695_v43, 0.0 }
  0xe0   : > { %v3275_v57 = vor.u32 %v3737_v46, %v3274_v45  ;;  %v3227_v46 = vor.u32 %v3725_v30, %v3226_v29  ;;  %v3348_v49 = vld [vmem:[#allocation4 + $0x1f8] sm:$0xf0]  ;;  %v3154_v29 = vld [vmem:[#allocation4 + $0x68] sm:$0xf]  ;;  %v3706_v30 = vld [vmem:[#allocation4 + $0x74] sm:$0xf0] }
  0xe1   : > { %v4481_v58 = vpack.c.b16 %v805_v53, %v803_v51  ;;  %v4483_v59 = vpack.c.b16 %v806_v54, %v804_v52  ;;  %v696_v38 = vpop.f32.mrf.mxu3  ;;  %v3276_v51 = vld [vmem:[#allocation4 + $0x170] sm:$0xf0]  ;;  %v683_v52 = vadd.f32 %v682_v37, %v588_v22  ;;  %v3130_v54 = vld [vmem:[#allocation4 + $0x40] sm:$0xf]  ;;  %v3218_v37 = vld [vmem:[#allocation4 + $0xe8] sm:$0xf] }
  0xe2   : > { %v697_v53 = vadd.f32 %v696_v38, %v589_v23  ;;  %v3131_v8 = vor.u32 %v3701_v55, %v3130_v54  ;;  %v3098_v23 = vld [vmem:[#allocation4] sm:$0xf]  ;;  %v3722_v38 = vld [vmem:[#allocation4 + $0xf4] sm:$0xf0]  ;;  %v3202_v54 = vld [vmem:[#allocation4 + $0xc8] sm:$0xf] }
  0xe3   : > { %1139 = vmatmul.bf16.vlgmr.msrb.gmra.mxu0 %v4481_v58  ;;  %1153 = vmatmul.bf16.vlgmr.msrb.gmra.mxu1 %v4483_v59  ;;  %v713_v4 = vmul.f32 0.1, %v683_v52  ;;  %vm705_vm7 = vcmp.gt.f32.partialorder %v683_v52, 0.0  ;;  %v3718_v55 = vld [vmem:[#allocation4 + $0xd4] sm:$0xf0] }
  0xe4   : > { %1167 = vmatmul.bf16.vlgmr.msrb.gmra.mxu2 %v4481_v58  ;;  %1181 = vmatmul.bf16.vlgmr.msrb.gmra.mxu3 %v4483_v59  ;;  %v714_v5 = vmul.f32 0.1, %v697_v53  ;;  %vm706_vm8 = vcmp.gt.f32.partialorder %v697_v53, 0.0 }
  0xe5   : > { %1647 = vmatpush.bf16.msrb.mxu0 %v3211_v60  ;;  %1661 = vmatpush.bf16.msrb.mxu1 %v3339_v61  ;;  %v3258_v60 = vld [vmem:[#allocation4 + $0x140] sm:$0xf]  ;;  %v3733_v61 = vld [vmem:[#allocation4 + $0x14c] sm:$0xf0] }
  0xe6   : > { %1675 = vmatpush.bf16.msrb.mxu2 %v3215_v2  ;;  %1689 = vmatpush.bf16.msrb.mxu3 %v3343_v3  ;;  %v3279_v2 = vor.u32 %v3735_v50, %v3276_v51  ;;  %v3132_v3 = vld [vmem:[#allocation4 + $0x50] sm:$0xf0]  ;;  %v3259_v9 = vor.u32 %v3733_v61, %v3258_v60  ;;  %v722_v16 = vsel %vm706_vm8, %v697_v53, %v714_v5  ;;  %v3330_v60 = vld [vmem:[#allocation4 + $0x1c8] sm:$0xf]  ;;  %v3750_v61 = vld [vmem:[#allocation4 + $0x1d4] sm:$0xf0] }
  0xe7   : > { %v3135_v12 = vor.u32 %v3699_v62, %v3132_v3  ;;  %v3103_v50 = vor.u32 %v3691_v33, %v3100_v34  ;;  %v3231_v51 = vor.u32 %v3723_v35, %v3228_v36  ;;  %v3347_v53 = vor.u32 %v3754_v41, %v3346_v40  ;;  %v3716_v62 = vld [vmem:[#allocation4 + $0xcc] sm:$0xf]  ;;  %v3332_v3 = vld [vmem:[#allocation4 + $0x1d8] sm:$0xf0]  ;;  %v3282_v33 = vld [vmem:[#allocation4 + $0x168] sm:$0xf] }
  0xe8   : > { %v3331_v5 = vor.u32 %v3750_v61, %v3330_v60  ;;  %v3738_v34 = vld [vmem:[#allocation4 + $0x174] sm:$0xf0]  ;;  %v3704_v35 = vld [vmem:[#allocation4 + $0x6c] sm:$0xf]  ;;  %v3156_v36 = vld [vmem:[#allocation4 + $0x78] sm:$0xf0] }
  0xe9   : > { %1648 = vmatpush.bf16.msrb.mxu0 %v3195_v10  ;;  %1662 = vmatpush.bf16.msrb.mxu1 %v3323_v11  ;;  %v717_v10 = vsel %vm701_vm5, %v681_v42, %v709_v63  ;;  %v718_v11 = vsel %vm702_vm6, %v695_v43, %v710_v0  ;;  %v3720_v42 = vld [vmem:[#allocation4 + $0xec] sm:$0xf]  ;;  %v3138_v40 = vld [vmem:[#allocation4 + $0x48] sm:$0xf]  ;;  %v3702_v41 = vld [vmem:[#allocation4 + $0x54] sm:$0xf0] }
  0xea   : > { %1676 = vmatpush.bf16.msrb.mxu2 %v3199_v14  ;;  %1690 = vmatpush.bf16.msrb.mxu3 %v3327_v15  ;;  %v3697_v14 = vld [vmem:[#allocation4 + $0x2c] sm:$0xf0]  ;;  %v721_v15 = vsel %vm705_vm7, %v683_v52, %v713_v4  ;;  %v724_v22 = vpack.c.bf16 %v718_v11, %v717_v10  ;;  %v3219_v52 = vor.u32 %v3722_v38, %v3218_v37  ;;  %v3314_v10 = vld [vmem:[#allocation4 + $0x1a8] sm:$0xf]  ;;  %v3746_v11 = vld [vmem:[#allocation4 + $0x1b4] sm:$0xf0] }
  0xeb   : > { %v726_v24 = vpack.c.bf16 %v722_v16, %v721_v15  ;;  %v3203_v4 = vor.u32 %v3718_v55, %v3202_v54  ;;  %v3316_v15 = vld [vmem:[#allocation4 + $0x1b8] sm:$0xf0]  ;;  %v3736_v37 = vld [vmem:[#allocation4 + $0x16c] sm:$0xf] }
  0xec   : > { %v1320_v43 = vunpack.c.h.b16 %v724_v22  ;;  %v3284_v38 = vld [vmem:[#allocation4 + $0x178] sm:$0xf0]  ;;  %v3696_v60 = vld [vmem:[#allocation4 + $0x2c] sm:$0xf] }
  0xed   : > { %1649 = vmatpush.bf16.msrb.mxu0 %v3179_v26  ;;  %1663 = vmatpush.bf16.msrb.mxu1 %v3307_v27  ;;  %v3115_v26 = vor.u32 %v3697_v14, %v3114_v13  ;;  %v1322_v45 = vunpack.c.h.b16 %v726_v24  ;;  %v3188_v13 = vld [vmem:[#allocation4 + $0xb8] sm:$0xf0]  ;;  %v3744_v14 = vld [vmem:[#allocation4 + $0x1ac] sm:$0xf] }
  0xee   : > { %1677 = vmatpush.bf16.msrb.mxu2 %v3183_v31  ;;  %1691 = vmatpush.bf16.msrb.mxu3 %v3311_v32  ;;  %v3119_v31 = vor.u32 %v3695_v18, %v3116_v19  ;;  %v3247_v32 = vor.u32 %v3727_v20, %v3244_v21  ;;  %v3319_v19 = vor.u32 %v3744_v14, %v3316_v15  ;;  %v3298_v20 = vld [vmem:[#allocation4 + $0x188] sm:$0xf]  ;;  %v3742_v21 = vld [vmem:[#allocation4 + $0x194] sm:$0xf0]  ;;  %v3124_v61 = vld [vmem:[#allocation4 + $0x38] sm:$0xf0] }
  0xef   : > { %v4501_v0 = vpack.c.b16 %v1322_v45, %v1320_v43  ;;  %v3287_v43 = vor.u32 %v3736_v37, %v3284_v38  ;;  %v3734_v45 = vld [vmem:[#allocation4 + $0x154] sm:$0xf0] }
  0xf0   : > { %v3774_v37 = vld [vmem:[%s4412_s27 + $0x98] sm:$0xff] }
  0xf1   : > { %1650 = vmatpush.bf16.msrb.mxu0 %v3163_v39  ;;  %1664 = vmatpush.bf16.msrb.mxu1 %v3291_v25  ;;  %v1319_v39 = vunpack.c.l.b16 %v724_v22  ;;  %v3099_v25 = vor.u32 %v3693_v28, %v3098_v23  ;;  %v3708_v22 = vld [vmem:[#allocation4 + $0x8c] sm:$0xf]  ;;  %v3172_v23 = vld [vmem:[#allocation4 + $0x98] sm:$0xf0]  ;;  %v3299_v28 = vor.u32 %v3742_v21, %v3298_v20  ;;  %v3759_v21 = vld [vmem:[%s4412_s27 + $0x20] sm:$0xff] }
  0xf2   : > { %1678 = vmatpush.bf16.msrb.mxu2 %v3167_v44  ;;  %1692 = vmatpush.bf16.msrb.mxu3 %v3295_v48  ;;  %v1321_v44 = vunpack.c.l.b16 %v726_v24  ;;  %v3752_v48 = vld [vmem:[#allocation4 + $0x1ec] sm:$0xf]  ;;  %v3794_v38 = vld [vmem:[%s4543_s13 + $0x38] sm:$0xff] }
  0xf3   : > { %1195 = vmatmul.bf16.vlgmr.msra.gmra.mxu0 %v4481_v58  ;;  %1209 = vmatmul.bf16.vlgmr.msra.gmra.mxu1 %v4483_v59  ;;  %v3740_v24 = vld [vmem:[#allocation4 + $0x18c] sm:$0xf] }
  0xf4   : > { %1223 = vmatmul.bf16.vlgmr.msra.gmra.mxu2 %v4481_v58  ;;  %1237 = vmatmul.bf16.vlgmr.msra.gmra.mxu3 %v4483_v59  ;;  %v3263_v58 = vor.u32 %v3731_v6, %v3260_v7  ;;  %v3729_v59 = vld [vmem:[#allocation4 + $0x12c] sm:$0xf0]  ;;  %v4499_v63 = vpack.c.b16 %v1321_v44, %v1319_v39  ;;  %v3186_v6 = vld [vmem:[#allocation4 + $0xa8] sm:$0xf]  ;;  %v3714_v7 = vld [vmem:[#allocation4 + $0xb4] sm:$0xf0]  ;;  %v3155_v39 = vor.u32 %v3706_v30, %v3154_v29 }
  0xf5   : > { %1651 = vmatpush.bf16.msrb.mxu0 %v3147_v56  ;;  %1665 = vmatpush.bf16.msrb.mxu1 %v3275_v57  ;;  %v3243_v27 = vor.u32 %v3729_v59, %v3242_v17  ;;  %v3223_v56 = vor.u32 %v3720_v42, %v3220_v47  ;;  %v3351_v57 = vor.u32 %v3752_v48, %v3348_v49  ;;  %v3170_v17 = vld [vmem:[#allocation4 + $0x88] sm:$0xf]  ;;  %v3710_v59 = vld [vmem:[#allocation4 + $0x94] sm:$0xf0]  ;;  %v3140_v47 = vld [vmem:[#allocation4 + $0x58] sm:$0xf0] }
  0xf6   : > { %1679 = vmatpush.bf16.msrb.mxu2 %v3151_v1  ;;  %1693 = vmatpush.bf16.msrb.mxu3 %v3279_v2  ;;  %v3204_v1 = vld [vmem:[#allocation4 + $0xd8] sm:$0xf0]  ;;  %v3748_v2 = vld [vmem:[#allocation4 + $0x1cc] sm:$0xf]  ;;  %v3187_v16 = vor.u32 %v3714_v7, %v3186_v6  ;;  %v3159_v42 = vor.u32 %v3704_v35, %v3156_v36  ;;  %v3266_v44 = vld [vmem:[#allocation4 + $0x148] sm:$0xf]  ;;  %v3127_v6 = vor.u32 %v3696_v60, %v3124_v61 }
  0xf7   : > { %v3732_v48 = vld [vmem:[#allocation4 + $0x14c] sm:$0xf]  ;;  %v3268_v49 = vld [vmem:[#allocation4 + $0x158] sm:$0xf0] }
  0xf8   : > { %v3271_v55 = vor.u32 %v3732_v48, %v3268_v49  ;;  %v3760_v20 = vld [vmem:[%s4412_s27 + $0x28] sm:$0xff]  ;;  %v3781_v48 = vld [vmem:[%s4412_s27 + $0xd0] sm:$0xff] }
  0xf9   : > { %1652 = vmatpush.bf16.msrb.mxu0 %v3131_v8  ;;  %1666 = vmatpush.bf16.msrb.mxu1 %v3259_v9  ;;  %v3207_v8 = vor.u32 %v3716_v62, %v3204_v1  ;;  %v3335_v9 = vor.u32 %v3748_v2, %v3332_v3  ;;  %v3728_v62 = vld [vmem:[#allocation4 + $0x12c] sm:$0xf]  ;;  %v3252_v1 = vld [vmem:[#allocation4 + $0x138] sm:$0xf0]  ;;  %v3801_v49 = vld [vmem:[%s4543_s13 + $0x70] sm:$0xff] }
  0xfa   : > { %1680 = vmatpush.bf16.msrb.mxu2 %v3135_v12  ;;  %1694 = vmatpush.bf16.msrb.mxu3 %v3263_v58  ;;  %v3712_v12 = vld [vmem:[#allocation4 + $0xac] sm:$0xf]  ;;  %v3315_v58 = vor.u32 %v3746_v11, %v3314_v10  ;;  %v3255_v7 = vor.u32 %v3728_v62, %v3252_v1  ;;  %v3108_v11 = vld [vmem:[#allocation4 + $0x18] sm:$0xf0] }
  0xfb   : > { %v3191_v18 = vor.u32 %v3712_v12, %v3188_v13  ;;  %v3692_v10 = vld [vmem:[#allocation4 + $0xc] sm:$0xf]  ;;  %v3236_v13 = vld [vmem:[#allocation4 + $0x118] sm:$0xf0] }
  0xfc   : > { %v3724_v12 = vld [vmem:[#allocation4 + $0x10c] sm:$0xf] }
  0xfd   : > { %1653 = vmatpush.bf16.msrb.mxu0 %v3115_v26  ;;  %1667 = vmatpush.bf16.msrb.mxu1 %v3243_v27  ;;  %v3300_v26 = vld [vmem:[#allocation4 + $0x198] sm:$0xf0]  ;;  %v3171_v27 = vor.u32 %v3710_v59, %v3170_v17  ;;  %v3756_v29 = vld [vmem:[%s4412_s27 + $0x8] sm:$0xff] }
  0xfe   : > { %1681 = vmatpush.bf16.msrb.mxu2 %v3119_v31  ;;  %1695 = vmatpush.bf16.msrb.mxu3 %v3247_v32  ;;  %v3175_v31 = vor.u32 %v3708_v22, %v3172_v23  ;;  %v3303_v32 = vor.u32 %v3740_v24, %v3300_v26  ;;  %v3762_v17 = vld [vmem:[%s4412_s27 + $0x38] sm:$0xff]  ;;  %v3767_v23 = vld [vmem:[%s4412_s27 + $0x60] sm:$0xff]  ;;  %v3757_v24 = vld [vmem:[%s4412_s27 + $0x10] sm:$0xff] }
  0xff   : > { %v3770_v59 = vld [vmem:[%s4412_s27 + $0x78] sm:$0xff]  ;;  %v3777_v26 = vld [vmem:[%s4412_s27 + $0xb0] sm:$0xff]  ;;  %v3776_v30 = vld [vmem:[%s4412_s27 + $0xa8] sm:$0xff] }
 0x100   : > { %v3778_v22 = vld [vmem:[%s4412_s27 + $0xb8] sm:$0xff]  ;;  %v3764_v35 = vld [vmem:[%s4412_s27 + $0x48] sm:$0xff] }
 0x101   : > { %1654 = vmatpush.bf16.msrb.mxu0 %v3099_v25  ;;  %1668 = vmatpush.bf16.msrb.mxu1 %v3227_v46  ;;  %v3283_v25 = vor.u32 %v3738_v34, %v3282_v33  ;;  %v3700_v46 = vld [vmem:[#allocation4 + $0x4c] sm:$0xf]  ;;  %v3755_v33 = vld [vmem:[%s4412_s27] sm:$0xff] }
 0x102   : > { %1682 = vmatpush.bf16.msrb.mxu2 %v3103_v50  ;;  %1696 = vmatpush.bf16.msrb.mxu3 %v3231_v51  ;;  %v3139_v50 = vor.u32 %v3702_v41, %v3138_v40  ;;  %v3267_v51 = vor.u32 %v3734_v45, %v3266_v44  ;;  %v3143_v54 = vor.u32 %v3700_v46, %v3140_v47  ;;  %v3775_v34 = vld [vmem:[%s4412_s27 + $0xa0] sm:$0xff]  ;;  %v3784_v36 = vld [vmem:[%s4412_s27 + $0xe8] sm:$0xff]  ;;  %v3773_v40 = vld [vmem:[%s4412_s27 + $0x90] sm:$0xff] }
 0x103   : > { %v3793_v41 = vld [vmem:[%s4543_s13 + $0x30] sm:$0xff]  ;;  %v4555_v44 = vld [vmem:[%s4735_s14] sm:$0xf]  ;;  %v3772_v45 = vld [vmem:[%s4412_s27 + $0x88] sm:$0xff] }
 0x104   : > { %1655 = vmatmul.bf16.vlgmr.msrb.gmra.mxu0 %v4499_v63  ;;  %1669 = vmatmul.bf16.vlgmr.msrb.gmra.mxu1 %v4501_v0  ;;  %v3792_v46 = vld [vmem:[%s4543_s13 + $0x28] sm:$0xff]  ;;  %v793_v47 = vperm.slane %v4555_v44, 0  ;;  %v794_v60 = vperm.slane %v4555_v44, 1 }
 0x105   : > { %1703 = vmatpush.bf16.msra.mxu0 %v3219_v52  ;;  %1717 = vmatpush.bf16.msra.mxu1 %v3347_v53  ;;  %v3122_v52 = vld [vmem:[#allocation4 + $0x28] sm:$0xf]  ;;  %v3698_v53 = vld [vmem:[#allocation4 + $0x34] sm:$0xf0] }
 0x106   : > { %1731 = vmatpush.bf16.msra.mxu2 %v3223_v56  ;;  %1745 = vmatpush.bf16.msra.mxu3 %v3351_v57  ;;  %v3250_v56 = vld [vmem:[#allocation4 + $0x128] sm:$0xf]  ;;  %v3730_v57 = vld [vmem:[#allocation4 + $0x134] sm:$0xf0]  ;;  %v3123_v2 = vor.u32 %v3698_v53, %v3122_v52  ;;  %v3771_v52 = vld [vmem:[%s4412_s27 + $0x80] sm:$0xff] }
 0x107   : > { %1683 = vmatmul.bf16.vlgmr.msrb.gmra.mxu2 %v4499_v63  ;;  %1697 = vmatmul.bf16.vlgmr.msrb.gmra.mxu3 %v4501_v0  ;;  %v3251_v3 = vor.u32 %v3730_v57, %v3250_v56  ;;  %v3791_v53 = vld [vmem:[%s4543_s13 + $0x20] sm:$0xff]  ;;  %v3800_v56 = vld [vmem:[%s4543_s13 + $0x68] sm:$0xff]  ;;  %v3790_v57 = vld [vmem:[%s4543_s13 + $0x18] sm:$0xff] }
 0x109   : > { %1704 = vmatpush.bf16.msra.mxu0 %v3203_v4  ;;  %1718 = vmatpush.bf16.msra.mxu1 %v3331_v5  ;;  %v3106_v4 = vld [vmem:[#allocation4 + $0x8] sm:$0xf]  ;;  %v3694_v5 = vld [vmem:[#allocation4 + $0x14] sm:$0xf0] }
 0x10a   : > { %1732 = vmatpush.bf16.msra.mxu2 %v3207_v8  ;;  %1746 = vmatpush.bf16.msra.mxu3 %v3335_v9  ;;  %v3234_v8 = vld [vmem:[#allocation4 + $0x108] sm:$0xf]  ;;  %v3726_v9 = vld [vmem:[#allocation4 + $0x114] sm:$0xf0]  ;;  %v3107_v14 = vor.u32 %v3694_v5, %v3106_v4 }
 0x10b   : > { %v3235_v15 = vor.u32 %v3726_v9, %v3234_v8 }
 0x10d   : > { %1705 = vmatpush.bf16.msra.mxu0 %v3187_v16  ;;  %1719 = vmatpush.bf16.msra.mxu1 %v3315_v58  ;;  %v3111_v16 = vor.u32 %v3692_v10, %v3108_v11  ;;  %v3239_v58 = vor.u32 %v3724_v12, %v3236_v13  ;;  %v3798_v11 = vld [vmem:[%s4543_s13 + $0x58] sm:$0xff]  ;;  %v3788_v13 = vld [vmem:[%s4543_s13 + $0x8] sm:$0xff] }
 0x10e   : > { %1733 = vmatpush.bf16.msra.mxu2 %v3191_v18  ;;  %1747 = vmatpush.bf16.msra.mxu3 %v3319_v19  ;;  %v3761_v18 = vld [vmem:[%s4412_s27 + $0x30] sm:$0xff] }
 0x10f   : > { %v3769_v19 = vld [vmem:[%s4412_s27 + $0x70] sm:$0xff] }
 0x111   : > { %1706 = vmatpush.bf16.msra.mxu0 %v3171_v27  ;;  %1720 = vmatpush.bf16.msra.mxu1 %v3299_v28  ;;  %v3766_v27 = vld [vmem:[%s4412_s27 + $0x58] sm:$0xff] }
 0x112   : > { %1734 = vmatpush.bf16.msra.mxu2 %v3175_v31  ;;  %1748 = vmatpush.bf16.msra.mxu3 %v3303_v32  ;;  %v3786_v28 = vld [vmem:[%s4412_s27 + $0xf8] sm:$0xff]  ;;  %v3765_v31 = vld [vmem:[%s4412_s27 + $0x50] sm:$0xff] }
 0x113   : > { %v3785_v32 = vld [vmem:[%s4412_s27 + $0xf0] sm:$0xff] }
 0x115   : > { %1707 = vmatpush.bf16.msra.mxu0 %v3155_v39  ;;  %1721 = vmatpush.bf16.msra.mxu1 %v3283_v25  ;;  %v3763_v39 = vld [vmem:[%s4412_s27 + $0x40] sm:$0xff] }
 0x116   : > { %1735 = vmatpush.bf16.msra.mxu2 %v3159_v42  ;;  %1749 = vmatpush.bf16.msra.mxu3 %v3287_v43  ;;  %v3783_v25 = vld [vmem:[%s4412_s27 + $0xe0] sm:$0xff]  ;;  %v3782_v42 = vld [vmem:[%s4412_s27 + $0xd8] sm:$0xff] }
 0x117   : > { %v3802_v43 = vld [vmem:[%s4543_s13 + $0x78] sm:$0xff] }
 0x119   : > { %1708 = vmatpush.bf16.msra.mxu0 %v3139_v50  ;;  %1722 = vmatpush.bf16.msra.mxu1 %v3267_v51 }
 0x11a   : > { %1736 = vmatpush.bf16.msra.mxu2 %v3143_v54  ;;  %1750 = vmatpush.bf16.msra.mxu3 %v3271_v55  ;;  %v3780_v55 = vld [vmem:[%s4412_s27 + $0xc8] sm:$0xff] }
 0x11d   : > { %1709 = vmatpush.bf16.msra.mxu0 %v3123_v2  ;;  %1723 = vmatpush.bf16.msra.mxu1 %v3251_v3  ;;  %v3779_v2 = vld [vmem:[%s4412_s27 + $0xc0] sm:$0xff] }
 0x11e   : > { %1737 = vmatpush.bf16.msra.mxu2 %v3127_v6  ;;  %1751 = vmatpush.bf16.msra.mxu3 %v3255_v7  ;;  %v3799_v3 = vld [vmem:[%s4543_s13 + $0x60] sm:$0xff]  ;;  %v3789_v7 = vld [vmem:[%s4543_s13 + $0x10] sm:$0xff] }
 0x121   : > { %1710 = vmatpush.bf16.msra.mxu0 %v3107_v14  ;;  %1724 = vmatpush.bf16.msra.mxu1 %v3235_v15 }
 0x122   : > { %1738 = vmatpush.bf16.msra.mxu2 %v3111_v16  ;;  %1752 = vmatpush.bf16.msra.mxu3 %v3239_v58 }
 0x124   : > { %1711 = vmatmul.bf16.vlgmr.msra.gmra.mxu0 %v4499_v63  ;;  %1725 = vmatmul.bf16.vlgmr.msra.gmra.mxu1 %v4501_v0 }
 0x125   : > { %2075 = vmatpush.bf16.msrb.mxu0 %v3762_v17  ;;  %2089 = vmatpush.bf16.msrb.mxu1 %v3770_v59  ;;  %v795_v59 = vperm.slane %v4555_v44, 2 }
 0x126   : > { %1739 = vmatmul.bf16.vlgmr.msra.gmra.mxu2 %v4499_v63  ;;  %1753 = vmatmul.bf16.vlgmr.msra.gmra.mxu3 %v4501_v0  ;;  %v3768_v63 = vld [vmem:[%s4412_s27 + $0x68] sm:$0xff]  ;;  %v3758_v0 = vld [vmem:[%s4412_s27 + $0x18] sm:$0xff]  ;;  %s4741_s27 = sld [smem:[#allocation31_spill]] (%p4320_p10) }
 0x127   : > { %2103 = vmatpush.bf16.msrb.mxu2 %v3778_v22  ;;  %2117 = vmatpush.bf16.msrb.mxu3 %v3786_v28  ;;  %v3810_v22 = vld [vmem:[%s4543_s13 + $0xb8] sm:$0xff] }
 0x129   : > { %2076 = vmatpush.bf16.msrb.mxu0 %v3761_v18  ;;  %2090 = vmatpush.bf16.msrb.mxu1 %v3769_v19  ;;  %v3797_v18 = vld [vmem:[%s4543_s13 + $0x50] sm:$0xff] }
 0x12b   : > { %2104 = vmatpush.bf16.msrb.mxu2 %v3777_v26  ;;  %2118 = vmatpush.bf16.msrb.mxu3 %v3785_v32  ;;  %v796_v32 = vperm.slane %v4555_v44, 3 }
 0x12d   : > { %2077 = vmatpush.bf16.msrb.mxu0 %v3760_v20  ;;  %2091 = vmatpush.bf16.msrb.mxu1 %v3768_v63 }
 0x12f   : > { %2105 = vmatpush.bf16.msrb.mxu2 %v3776_v30  ;;  %2119 = vmatpush.bf16.msrb.mxu3 %v3784_v36 }
 0x131   : > { %2078 = vmatpush.bf16.msrb.mxu0 %v3759_v21  ;;  %2092 = vmatpush.bf16.msrb.mxu1 %v3767_v23 }
 0x133   : > { %2106 = vmatpush.bf16.msrb.mxu2 %v3775_v34  ;;  %2120 = vmatpush.bf16.msrb.mxu3 %v3783_v25 }
 0x135   : > { %2079 = vmatpush.bf16.msrb.mxu0 %v3758_v0  ;;  %2093 = vmatpush.bf16.msrb.mxu1 %v3766_v27  ;;  %v3787_v0 = vld [vmem:[%s4543_s13] sm:$0xff]  ;;  %v3796_v27 = vld [vmem:[%s4543_s13 + $0x48] sm:$0xff] }
 0x137   : > { %2107 = vmatpush.bf16.msrb.mxu2 %v3774_v37  ;;  %2121 = vmatpush.bf16.msrb.mxu3 %v3782_v42  ;;  %v3795_v37 = vld [vmem:[%s4543_s13 + $0x40] sm:$0xff] }
 0x139   : > { %2080 = vmatpush.bf16.msrb.mxu0 %v3757_v24  ;;  %2094 = vmatpush.bf16.msrb.mxu1 %v3765_v31 }
 0x13b   : > { %2108 = vmatpush.bf16.msrb.mxu2 %v3773_v40  ;;  %2122 = vmatpush.bf16.msrb.mxu3 %v3781_v48 }
 0x13d   : > { %2081 = vmatpush.bf16.msrb.mxu0 %v3756_v29  ;;  %2095 = vmatpush.bf16.msrb.mxu1 %v3764_v35  ;;  %v3809_v29 = vld [vmem:[%s4543_s13 + $0xb0] sm:$0xff] }
 0x13f   : > { %2109 = vmatpush.bf16.msrb.mxu2 %v3772_v45  ;;  %2123 = vmatpush.bf16.msrb.mxu3 %v3780_v55  ;;  %v3817_v45 = vld [vmem:[%s4543_s13 + $0xf0] sm:$0xff] }
 0x141   : > { %2082 = vmatpush.bf16.msrb.mxu0 %v3755_v33  ;;  %2096 = vmatpush.bf16.msrb.mxu1 %v3763_v39 }
 0x143   : > { %2110 = vmatpush.bf16.msrb.mxu2 %v3771_v52  ;;  %2124 = vmatpush.bf16.msrb.mxu3 %v3779_v2 }
 0x145   : > { %2391 = vmatpush.bf16.msra.mxu0 %v3794_v38  ;;  %2405 = vmatpush.bf16.msra.mxu1 %v3802_v43  ;;  %v3818_v38 = vld [vmem:[%s4543_s13 + $0xf8] sm:$0xff] }
 0x147   : > { %2419 = vmatpush.bf16.msra.mxu2 %v3810_v22  ;;  %2433 = vmatpush.bf16.msra.mxu3 %v3818_v38 }
 0x149   : > { %2392 = vmatpush.bf16.msra.mxu0 %v3793_v41  ;;  %2406 = vmatpush.bf16.msra.mxu1 %v3801_v49  ;;  %v3808_v41 = vld [vmem:[%s4543_s13 + $0xa8] sm:$0xff]  ;;  %v4588_v49 = vld [vmem:[%s4736_s15] sm:$0xf] }
 0x14b   : > { %2420 = vmatpush.bf16.msra.mxu2 %v3809_v29  ;;  %2434 = vmatpush.bf16.msra.mxu3 %v3817_v45 }
 0x14d   : > { %2393 = vmatpush.bf16.msra.mxu0 %v3792_v46  ;;  %2407 = vmatpush.bf16.msra.mxu1 %v3800_v56  ;;  %v3807_v46 = vld [vmem:[%s4543_s13 + $0xa0] sm:$0xff] }
 0x14f   : > { %2421 = vmatpush.bf16.msra.mxu2 %v3808_v41 }
 0x151   : > { %2394 = vmatpush.bf16.msra.mxu0 %v3791_v53  ;;  %2408 = vmatpush.bf16.msra.mxu1 %v3799_v3  ;;  %v3815_v3 = vld [vmem:[%s4543_s13 + $0xe0] sm:$0xff] }
 0x153   : > { %2422 = vmatpush.bf16.msra.mxu2 %v3807_v46 }
 0x155   : > { %2395 = vmatpush.bf16.msra.mxu0 %v3790_v57  ;;  %2409 = vmatpush.bf16.msra.mxu1 %v3798_v11  ;;  %v1309_v57 = vperm.slane %v4588_v49, 0  ;;  %v1310_v11 = vperm.slane %v4588_v49, 1 }
 0x159   : > { %2396 = vmatpush.bf16.msra.mxu0 %v3789_v7  ;;  %2410 = vmatpush.bf16.msra.mxu1 %v3797_v18 }
 0x15d   : > { %2397 = vmatpush.bf16.msra.mxu0 %v3788_v13  ;;  %2411 = vmatpush.bf16.msra.mxu1 %v3796_v27 }
 0x160   : > { %v1140_v50 = vpop.f32.mrf.mxu0  ;;  %v1154_v51 = vpop.f32.mrf.mxu1 }
 0x161   : > { %v1141_v54 = vadd.f32 %v1140_v50, %v793_v47  ;;  %2398 = vmatpush.bf16.msra.mxu0 %v3787_v0  ;;  %2412 = vmatpush.bf16.msra.mxu1 %v3795_v37  ;;  %v3812_v0 = vld [vmem:[%s4543_s13 + $0xc8] sm:$0xff]  ;;  %v1311_v37 = vperm.slane %v4588_v49, 2 }
 0x163   : > { %v1155_v61 = vadd.f32 %v1154_v51, %v1141_v54  ;;  %v3816_v54 = vld [vmem:[%s4543_s13 + $0xe8] sm:$0xff] }
 0x164   : > { %2435 = vmatpush.bf16.msra.mxu3 %v3816_v54 }
 0x165   : > { %v1767_v9 = vmul.f32 0.1, %v1155_v61  ;;  %vm1759_vm9 = vcmp.gt.f32.partialorder %v1155_v61, 0.0 }
 0x167   : > { %v1168_v62 = vpop.f32.mrf.mxu2  ;;  %v1182_v1 = vpop.f32.mrf.mxu3  ;;  %v1775_v15 = vsel %vm1759_vm9, %v1155_v61, %v1767_v9 }
 0x168   : > { %v1142_v4 = vpop.f32.mrf.mxu0  ;;  %v1156_v5 = vpop.f32.mrf.mxu1  ;;  %v1169_v8 = vadd.f32 %v1168_v62, %v794_v60  ;;  %2436 = vmatpush.bf16.msra.mxu3 %v3815_v3 }
 0x169   : > { %v1143_v6 = vadd.f32 %v1142_v4, %v793_v47 }
 0x16a   : > { %v1183_v14 = vadd.f32 %v1182_v1, %v1169_v8 }
 0x16b   : > { %v1157_v10 = vadd.f32 %v1156_v5, %v1143_v6  ;;  %v3805_v6 = vld [vmem:[%s4543_s13 + $0x90] sm:$0xff] }
 0x16c   : > { %v1768_v23 = vmul.f32 0.1, %v1183_v14  ;;  %vm1760_vm11 = vcmp.gt.f32.partialorder %v1183_v14, 0.0 }
 0x16d   : > { %vm1763_vm10 = vcmp.gt.f32.partialorder %v1157_v10, 0.0  ;;  %v1771_v12 = vmul.f32 0.1, %v1157_v10 }
 0x16e   : > { %v1776_v30 = vsel %vm1760_vm11, %v1183_v14, %v1768_v23 }
 0x16f   : > { %v1779_v16 = vsel %vm1763_vm10, %v1157_v10, %v1771_v12  ;;  %v1170_v58 = vpop.f32.mrf.mxu2  ;;  %v1184_v17 = vpop.f32.mrf.mxu3  ;;  %v3814_v10 = vld [vmem:[%s4543_s13 + $0xd8] sm:$0xff] }
 0x170   : > { %v1783_v19 = vpack.c.bf16 %v1779_v16, %v1775_v15  ;;  %v1171_v20 = vadd.f32 %v1170_v58, %v794_v60  ;;  %v1196_v21 = vpop.f32.mrf.mxu0  ;;  %v1210_v63 = vpop.f32.mrf.mxu1  ;;  %v3806_v60 = vld [vmem:[%s4543_s13 + $0x98] sm:$0xff]  ;;  %v3804_v15 = vld [vmem:[%s4543_s13 + $0x88] sm:$0xff]  ;;  %2437 = vmatpush.bf16.msra.mxu3 %v3814_v10 }
 0x171   : > { %v1197_v26 = vadd.f32 %v1196_v21, %v795_v59  ;;  %2423 = vmatpush.bf16.msra.mxu2 %v3806_v60  ;;  %v3803_v21 = vld [vmem:[%s4543_s13 + $0x80] sm:$0xff] }
 0x172   : > { %v1185_v24 = vadd.f32 %v1184_v17, %v1171_v20  ;;  %2083 = vmatmul.bf16.vlgmr.msrb.gmra.mxu0 %v1783_v19  ;;  %v3813_v17 = vld [vmem:[%s4543_s13 + $0xd0] sm:$0xff] }
 0x173   : > { %v1211_v34 = vadd.f32 %v1210_v63, %v1197_v26 }
 0x174   : > { %vm1764_vm12 = vcmp.gt.f32.partialorder %v1185_v24, 0.0  ;;  %v1772_v28 = vmul.f32 0.1, %v1185_v24  ;;  %2438 = vmatpush.bf16.msra.mxu3 %v3813_v17 }
 0x175   : > { %v1769_v43 = vmul.f32 0.1, %v1211_v34  ;;  %vm1761_vm13 = vcmp.gt.f32.partialorder %v1211_v34, 0.0  ;;  %2424 = vmatpush.bf16.msra.mxu2 %v3805_v6 }
 0x176   : > { %v1780_v31 = vsel %vm1764_vm12, %v1185_v24, %v1772_v28 }
 0x177   : > { %v1784_v33 = vpack.c.bf16 %v1780_v31, %v1776_v30  ;;  %v1224_v35 = vpop.f32.mrf.mxu2  ;;  %v1238_v36 = vpop.f32.mrf.mxu3  ;;  %v1777_v50 = vsel %vm1761_vm13, %v1211_v34, %v1769_v43  ;;  %v3811_v30 = vld [vmem:[%s4543_s13 + $0xc0] sm:$0xff] }
 0x178   : > { %v1198_v39 = vpop.f32.mrf.mxu0  ;;  %v1212_v25 = vpop.f32.mrf.mxu1  ;;  %v1225_v42 = vadd.f32 %v1224_v35, %v796_v32  ;;  %2439 = vmatpush.bf16.msra.mxu3 %v3812_v0 }
 0x179   : > { %v1199_v40 = vadd.f32 %v1198_v39, %v795_v59  ;;  %2097 = vmatmul.bf16.vlgmr.msrb.gmra.mxu1 %v1784_v33  ;;  %2425 = vmatpush.bf16.msra.mxu2 %v3804_v15 }
 0x17a   : > { %v1239_v48 = vadd.f32 %v1238_v36, %v1225_v42 }
 0x17b   : > { %v1213_v44 = vadd.f32 %v1212_v25, %v1199_v40  ;;  %v1312_v40 = vperm.slane %v4588_v49, 3 }
 0x17c   : > { %v1770_v61 = vmul.f32 0.1, %v1239_v48  ;;  %vm1762_vm15 = vcmp.gt.f32.partialorder %v1239_v48, 0.0  ;;  %2440 = vmatpush.bf16.msra.mxu3 %v3811_v30 }
 0x17d   : > { %vm1765_vm14 = vcmp.gt.f32.partialorder %v1213_v44, 0.0  ;;  %v1773_v47 = vmul.f32 0.1, %v1213_v44  ;;  %2426 = vmatpush.bf16.msra.mxu2 %v3803_v21 }
 0x17e   : > { %v1778_v7 = vsel %vm1762_vm15, %v1239_v48, %v1770_v61 }
 0x17f   : > { %v1781_v51 = vsel %vm1765_vm14, %v1213_v44, %v1773_v47  ;;  %v1226_v52 = vpop.f32.mrf.mxu2  ;;  %v1240_v53 = vpop.f32.mrf.mxu3 }
 0x180   : > { %v1785_v55 = vpack.c.bf16 %v1781_v51, %v1777_v50  ;;  %v1227_v56 = vadd.f32 %v1226_v52, %v796_v32 }
 0x181   : > { %v1656_v1 = vpop.f32.mrf.mxu0  ;;  %v1670_v2 = vpop.f32.mrf.mxu1 }
 0x182   : > { %v1241_v62 = vadd.f32 %v1240_v53, %v1227_v56  ;;  %2111 = vmatmul.bf16.vlgmr.msrb.gmra.mxu2 %v1785_v55  ;;  %v1657_v5 = vadd.f32 %v1656_v1, %v1309_v57 }
 0x184   : > { %vm1766_vm0 = vcmp.gt.f32.partialorder %v1241_v62, 0.0  ;;  %v1774_v4 = vmul.f32 0.1, %v1241_v62  ;;  %v1671_v12 = vadd.f32 %v1670_v2, %v1657_v5  ;;  %v3949_v5 = vld [vmem:[%s567_s19] ss:$0 sm:$0xff]  ;;  %s3819_s19 = sshll.u32 (%p4320_p10), %s4157_s26, 2 }
 0x185   : > { %s2506_s13 = sadd.s32 (%p4320_p10), %s4740_s29, %s3819_s19 }
 0x186   : > { %v1782_v8 = vsel %vm1766_vm0, %v1241_v62, %v1774_v4  ;;  %v1795_v19 = vmul.f32 0.1, %v1671_v12  ;;  %vm1787_vm1 = vcmp.gt.f32.partialorder %v1671_v12, 0.0  ;;  %s3612_s11 = sshll.u32 (%p4320_p10), %s2506_s13, 2 }
 0x187   : > { %v1786_v9 = vpack.c.bf16 %v1782_v8, %v1778_v7  ;;  %s2508_s12 = scalar_lea.vmem (%p4320_p10), %s4741_s27, %s3612_s11 }
 0x188   : > { %v1803_v23 = vsel %vm1787_vm1, %v1671_v12, %v1795_v19 }
 0x189   : > { %2125 = vmatmul.bf16.vlgmr.msrb.gmra.mxu3 %v1786_v9  ;;  %v1658_v16 = vpop.f32.mrf.mxu0  ;;  %v1672_v18 = vpop.f32.mrf.mxu1 }
 0x18a   : > { %v1684_v13 = vpop.f32.mrf.mxu2  ;;  %v1698_v14 = vpop.f32.mrf.mxu3  ;;  %v1659_v58 = vadd.f32 %v1658_v16, %v1309_v57 }
 0x18b   : > { %v1685_v59 = vadd.f32 %v1684_v13, %v1310_v11 }
 0x18c   : > { %v1673_v20 = vadd.f32 %v1672_v18, %v1659_v58 }
 0x18d   : > { %v1699_v22 = vadd.f32 %v1698_v14, %v1685_v59 }
 0x18e   : > { %vm1791_vm2 = vcmp.gt.f32.partialorder %v1673_v20, 0.0  ;;  %v1799_v63 = vmul.f32 0.1, %v1673_v20 }
 0x18f   : > { %v1796_v31 = vmul.f32 0.1, %v1699_v22  ;;  %vm1788_vm3 = vcmp.gt.f32.partialorder %v1699_v22, 0.0 }
 0x190   : > { %v1807_v24 = vsel %vm1791_vm2, %v1673_v20, %v1799_v63 }
 0x191   : > { %v1811_v27 = vpack.c.bf16 %v1807_v24, %v1803_v23  ;;  %v1804_v34 = vsel %vm1788_vm3, %v1699_v22, %v1796_v31 }
 0x192   : > { %v1686_v26 = vpop.f32.mrf.mxu2  ;;  %v1700_v29 = vpop.f32.mrf.mxu3 }
 0x193   : > { %v1687_v28 = vadd.f32 %v1686_v26, %v1310_v11  ;;  %2399 = vmatmul.bf16.vlgmr.msra.gmra.mxu0 %v1811_v27 }
 0x195   : > { %v1701_v32 = vadd.f32 %v1700_v29, %v1687_v28  ;;  %v3950_v28 = vld [vmem:[%s570_s6] ss:$0 sm:$0xff] }
 0x197   : > { %vm1792_vm4 = vcmp.gt.f32.partialorder %v1701_v32, 0.0  ;;  %v1800_v33 = vmul.f32 0.1, %v1701_v32 }
 0x199   : > { %v1808_v35 = vsel %vm1792_vm4, %v1701_v32, %v1800_v33 }
 0x19a   : > { %v1812_v36 = vpack.c.bf16 %v1808_v35, %v1804_v34 }
 0x19c   : > { %2413 = vmatmul.bf16.vlgmr.msra.gmra.mxu1 %v1812_v36 }
 0x1a1   : > { %v1712_v38 = vpop.f32.mrf.mxu0  ;;  %v1726_v39 = vpop.f32.mrf.mxu1 }
 0x1a2   : > { %v1713_v25 = vadd.f32 %v1712_v38, %v1311_v37 }
 0x1a4   : > { %v1727_v41 = vadd.f32 %v1726_v39, %v1713_v25 }
 0x1a6   : > { %v1797_v48 = vmul.f32 0.1, %v1727_v41  ;;  %vm1789_vm5 = vcmp.gt.f32.partialorder %v1727_v41, 0.0 }
 0x1a8   : > { %v1805_v53 = vsel %vm1789_vm5, %v1727_v41, %v1797_v48 }
 0x1a9   : > { %v1740_v42 = vpop.f32.mrf.mxu2  ;;  %v1754_v43 = vpop.f32.mrf.mxu3 }
 0x1aa   : > { %v1714_v44 = vpop.f32.mrf.mxu0  ;;  %v1741_v46 = vadd.f32 %v1740_v42, %v1312_v40  ;;  %v1728_v47 = vpop.f32.mrf.mxu1 }
 0x1ab   : > { %v1715_v45 = vadd.f32 %v1714_v44, %v1311_v37 }
 0x1ac   : > { %v1755_v52 = vadd.f32 %v1754_v43, %v1741_v46 }
 0x1ad   : > { %v1729_v50 = vadd.f32 %v1728_v47, %v1715_v45 }
 0x1ae   : > { %v1798_v60 = vmul.f32 0.1, %v1755_v52  ;;  %vm1790_vm7 = vcmp.gt.f32.partialorder %v1755_v52, 0.0 }
 0x1af   : > { %vm1793_vm6 = vcmp.gt.f32.partialorder %v1729_v50, 0.0  ;;  %v1801_v51 = vmul.f32 0.1, %v1729_v50 }
 0x1b0   : > { %v1806_v1 = vsel %vm1790_vm7, %v1755_v52, %v1798_v60 }
 0x1b1   : > { %v1809_v54 = vsel %vm1793_vm6, %v1729_v50, %v1801_v51  ;;  %v1742_v55 = vpop.f32.mrf.mxu2  ;;  %v1756_v49 = vpop.f32.mrf.mxu3 }
 0x1b2   : > { %v1813_v56 = vpack.c.bf16 %v1809_v54, %v1805_v53  ;;  %v1743_v57 = vadd.f32 %v1742_v55, %v1312_v40 }
 0x1b4   : > { %v1757_v61 = vadd.f32 %v1756_v49, %v1743_v57  ;;  %2427 = vmatmul.bf16.vlgmr.msra.gmra.mxu2 %v1813_v56 }
 0x1b6   : > { %vm1794_vm8 = vcmp.gt.f32.partialorder %v1757_v61, 0.0  ;;  %v1802_v62 = vmul.f32 0.1, %v1757_v61 }
 0x1b8   : > { %v1810_v2 = vsel %vm1794_vm8, %v1757_v61, %v1802_v62 }
 0x1b9   : > { %v1814_v3 = vpack.c.bf16 %v1810_v2, %v1806_v1 }
 0x1bb   : > { %2441 = vmatmul.bf16.vlgmr.msra.gmra.mxu3 %v1814_v3 }
 0x1ef   : > { %v2084_v4 = vpop.f32.mrf.mxu0 }
 0x1f0   : > { %v2085_v8 = vadd.f32 %v3949_v5, %v2084_v4 }
 0x1f6   : > { %v2098_v6 = vpop.f32.mrf.mxu1 }
 0x1f7   : > { %v2099_v9 = vadd.f32 %v2098_v6, %v2085_v8  ;;  %v2086_v11 = vpop.f32.mrf.mxu0 }
 0x1f8   : > { %v2087_v15 = vadd.f32 %v3949_v5, %v2086_v11 }
 0x1fe   : > { %v2100_v14 = vpop.f32.mrf.mxu1 }
 0x1ff   : > { %v2101_v58 = vadd.f32 %v2100_v14, %v2087_v15 }
 0x205   : > { %v2112_v7 = vpop.f32.mrf.mxu2 }
 0x206   : > { %v2113_v10 = vadd.f32 %v2112_v7, %v2099_v9 }
 0x20c   : > { %v2126_v12 = vpop.f32.mrf.mxu3 }
 0x20d   : > { %v2127_v13 = vadd.f32 %v2126_v12, %v2113_v10  ;;  %v2114_v16 = vpop.f32.mrf.mxu2 }
 0x20e   : > { %v2115_v59 = vadd.f32 %v2114_v16, %v2101_v58 }
 0x20f   : > { %v2447_v17 = vmul.f32 0.5, %v2127_v13 }
 0x210   : > { %v2400_v27 = vpop.f32.mrf.mxu0 }
 0x211   : > { %3951 = vtanh.f32 %v2447_v17  ;;  %v2401_v31 = vadd.f32 %v3950_v28, %v2400_v27 }
 0x214   : > { %v2128_v18 = vpop.f32.mrf.mxu3 }
 0x215   : > { %v2129_v19 = vadd.f32 %v2128_v18, %v2115_v59 }
 0x217   : > { %v2448_v20 = vmul.f32 0.5, %v2129_v19  ;;  %v3952_v21 = vpop.eup %3951 }
 0x218   : > { %v2451_v63 = vmul.f32 0.5, %v3952_v21  ;;  %v2402_v34 = vpop.f32.mrf.mxu0 }
 0x219   : > { %3953 = vtanh.f32 %v2448_v20  ;;  %v2414_v29 = vpop.f32.mrf.mxu1  ;;  %v2403_v38 = vadd.f32 %v3950_v28, %v2402_v34 }
 0x21a   : > { %v2453_v23 = vadd.f32 0.5, %v2451_v63  ;;  %v2415_v32 = vadd.f32 %v2414_v29, %v2401_v31 }
 0x21f   : > { %v3954_v0 = vpop.eup %3953 }
 0x220   : > { %v2452_v22 = vmul.f32 0.5, %v3954_v0 }
 0x221   : > { %v2416_v37 = vpop.f32.mrf.mxu1 }
 0x222   : > { %v2454_v24 = vadd.f32 0.5, %v2452_v22  ;;  %v2417_v40 = vadd.f32 %v2416_v37, %v2403_v38 }
 0x224   : > { %v3824_v26 = vpack.c.bf16 %v2454_v24, %v2453_v23 }
 0x226   : > { %3825 = vst [vmem:[%s4617_s21] sm:$0xff] %v3824_v26  }
 0x22d   : > { %v2525_v12 = vld [vmem:[%s4617_s21] sm:$0xf] (%p4320_p10)  ;;  %v2527_v13 = vld [vmem:[%s4617_s21 + $0x4] sm:$0xf] (%p4320_p10) }
 0x22e   : > { %2526 = vst [vmem:[%s2508_s12] sm:$0xf] (%p4320_p10), %v2525_v12 }
 0x22f   : > { %2528 = vst [vmem:[%s2508_s12 + $0x8] sm:$0xf] (%p4320_p10), %v2527_v13 }
 0x237   : > { %v2428_v30 = vpop.f32.mrf.mxu2 }
 0x238   : > { %v2429_v33 = vadd.f32 %v2428_v30, %v2415_v32 }
 0x23e   : > { %v2442_v35 = vpop.f32.mrf.mxu3 }
 0x23f   : > { %v2443_v36 = vadd.f32 %v2442_v35, %v2429_v33  ;;  %v2430_v25 = vpop.f32.mrf.mxu2 }
 0x240   : > { %v2431_v43 = vadd.f32 %v2430_v25, %v2417_v40 }
 0x241   : > { %v2461_v39 = vand.u32 2147483647, %v2443_v36  ;;  %v2459_v6 = vmax.f32 %v2443_v36, 0.0 }
 0x243   : > { %v2463_v41 = vsub.f32 0.0, %v2461_v39 }
 0x245   : > { %v2465_v42 = vmul.f32 1.442695, %v2463_v41 }
 0x246   : > { %v2444_v44 = vpop.f32.mrf.mxu3 }
 0x247   : > { %3955 = vpow2.f32 %v2465_v42  ;;  %v2445_v45 = vadd.f32 %v2444_v44, %v2431_v43 }
 0x249   : > { %v2462_v46 = vand.u32 2147483647, %v2445_v45  ;;  %v2460_v7 = vmax.f32 %v2445_v45, 0.0 }
 0x24b   : > { %v2464_v47 = vsub.f32 0.0, %v2462_v46 }
 0x24d   : > { %v3956_v48 = vpop.eup %3955  ;;  %v2467_v50 = vmul.f32 1.442695, %v2464_v47 }
 0x24e   : > { %v2469_v51 = vadd.f32 1.0, %v3956_v48  ;;  %v2472_v53 = vmul.f32 -0.5, %v3956_v48  ;;  %v2475_v49 = vand.u32 2147483647, %v3956_v48 }
 0x24f   : > { %3957 = vpow2.f32 %v2467_v50 }
 0x250   : > { %3959 = vlog2.f32 %v2469_v51  ;;  %v2473_v57 = vadd.f32 1.0, %v2472_v53  ;;  %vm2476_vm9 = vcmp.lt.f32.partialorder %v2475_v49, 0.0004427343 }
 0x252   : > { %v2474_v1 = vmul.f32 %v3956_v48, %v2473_v57 }
 0x255   : > { %v3958_v52 = vpop.eup %3957 }
 0x256   : > { %v2478_v54 = vadd.f32 1.0, %v3958_v52  ;;  %v2481_v55 = vmul.f32 -0.5, %v3958_v52  ;;  %v3960_v56 = vpop.eup %3959  ;;  %v2484_v62 = vand.u32 2147483647, %v3958_v52 }
 0x257   : > { %v2471_v60 = vmul.f32 0.6931472, %v3960_v56 }
 0x258   : > { %3961 = vlog2.f32 %v2478_v54  ;;  %v2482_v61 = vadd.f32 1.0, %v2481_v55  ;;  %vm2485_vm10 = vcmp.lt.f32.partialorder %v2484_v62, 0.0004427343 }
 0x259   : > { %v2477_v3 = vsel %vm2476_vm9, %v2474_v1, %v2471_v60 }
 0x25a   : > { %v2483_v5 = vmul.f32 %v3958_v52, %v2482_v61  ;;  %v2487_v9 = vadd.f32 %v2477_v3, %v2459_v6 }
 0x25e   : > { %v3962_v2 = vpop.eup %3961 }
 0x25f   : > { %v2480_v4 = vmul.f32 0.6931472, %v3962_v2 }
 0x261   : > { %v2486_v8 = vsel %vm2485_vm10, %v2483_v5, %v2480_v4 }
 0x262   : > { %v2488_v10 = vadd.f32 %v2486_v8, %v2460_v7  ;;  %2503 = sbr.rel (!%p4320_p10) target bundleno = 615 (0x267), region = 84 }
 0x264   : > { %v3829_v11 = vpack.c.bf16 %v2488_v10, %v2487_v9 }
 0x266   : > { %3830 = vst [vmem:[%s558_s3] sm:$0xff] %v3829_v11  }
 0x267 PF: > { %2556 = sbr.rel (!%p4320_p10) target bundleno = 626 (0x272), region = 125  ;;  %s4743_s17 = sld [smem:[#allocation15_spill]] (%p4320_p10) }
 0x268   : > { %s3820_s20 = sshll.u32 (%p4320_p10), %s4157_s26, 2  ;;  %s4744_s23 = sld [smem:[#allocation32_spill]] (%p4320_p10) }
 0x26d   : > { %s2559_s6 = sadd.s32 %s4743_s17, %s3820_s20  ;;  %v2578_v14 = vld [vmem:[%s558_s3] sm:$0xf]  ;;  %v2580_v15 = vld [vmem:[%s558_s3 + $0x4] sm:$0xf] }
 0x26e   : > { %s3615_s8 = sshll.u32 %s2559_s6, 2 }
 0x26f   : > { %s2561_s0 = scalar_lea.vmem %s4744_s23, %s3615_s8 }
 0x270   : > { %2579 = vst [vmem:[%s2561_s0] sm:$0xf] %v2578_v14 }
 0x271   : > { %2581 = vst [vmem:[%s2561_s0 + $0x8] sm:$0xf] %v2580_v15 }
 0x272 PF: > { %s4745_s21 = sld [smem:[#allocation18_spill]]  ;;  %s4754_s23 = smov %s4149_s24 }
 0x273   : > { %s4746_s7 = sld [smem:[#allocation14_spill]] }
 0x274   : > { %s4747_s25 = sld [smem:[#allocation22_spill]] }
 0x275   : > { %s4748_s26 = sld [smem:[#allocation16_spill]] }
 0x276   : > { %s4749_s27 = sld [smem:[#allocation17_spill]] }
 0x277   : > { %s4750_s28 = sld [smem:[#allocation20_spill]] }
 0x278   : > { %s25_s30 = sadd.s32 1, %s4745_s21   ;;  %s4751_s29 = sld [smem:[#allocation21_spill]] }
 0x279   : > { %p22_p5 = scmp.ge.s32.totalorder %s25_s30, 6   ;;  %s4752_s21 = smov %s4141_s22 }
 0x27a   : > { %s4753_s22 = smov %s4379_s2  ;;  %s4755_s24 = smov %s4746_s7 }
 0x27b   :  { %24 = sbr.rel (!%p22_p5) target bundleno = 17 (0x11), region = 225 }
 0x280   :  { %2626 = vsyncpa [#allocation3], 1 }
 0x281   :  { %2628 = vsyncpa [#allocation3 + $0x1], 1 }
 0x282   :  { %2629 = vsyncpa [#allocation5], 1 }

</bundles_post_ra>
